<compile_context>
chip_gen: v6e
topology: v6e:2x2x1
jax: 0.10.0
libtpu: 0.0.40
codegen_flags: <defaults>
</compile_context>

<pallas_src>
import numpy as np
import jax
import jax.numpy as jnp
from jax.experimental import pallas as pl
from jax.experimental.pallas import tpu as pltpu

hid_size = 64
n_slots = 2
n_rounds = 1
n_types = 2

ATK_OB_LEN = n_types + n_rounds + n_types   # 5
DFD_OB_LEN = n_types + n_rounds             # 3
CRIT_IN_LEN = ATK_OB_LEN + 4 * n_slots      # 13

# --- column layout of the packed (2*hid, NC) weight array --------------------
COL_W1 = 0       # 5 cols: stacked actor affine1 weight columns (atk rows 0:64,
                 #         dfd rows 64:128; dfd padded with zeros for atk_type)
COL_B1 = 5       # stacked actor affine1 bias
COL_CWB = 6      # 5 cols: critic W1 block for [prior, r, atk_type]
COL_CB1 = 11     # critic first-layer bias
COL_CWAP = 12    # 2 cols: critic W1 block for atk_prob
COL_CWAA = 14    # 2 cols: critic W1 block for atk_ac one-hot
COL_CWDP = 16    # 2 cols: critic W1 block for dfd_prob
COL_CWDA = 18    # 2 cols: critic W1 block for dfd_ac one-hot
COL_WDIFF = 20   # stacked actor affine2 logit-difference weights
COL_CW2 = 21     # critic head weight
NC = 24          # padded column count


def model_kernel(x_ref, w_ref, s_ref, y_ref):
    """x_ref: (8, TB) [rows 0:5 = atk_ob, rest zero], w_ref: (128, NC),
    s_ref: SMEM (4,) scalars [atk logit bias diff, dfd logit bias diff, cb2, 0],
    y_ref: (1, TB)."""
    H = hid_size
    x = x_ref[...]                                        # (8, TB)
    w = w_ref[...]                                        # (2H, NC)

    # ---- stacked attacker/defender hidden layer: K=5 rank-1 VPU FMAs + ReLU
    h = w[:, COL_B1:COL_B1 + 1]                           # (2H, 1) broadcasts
    for k in range(ATK_OB_LEN):
        h = h + w[:, COL_W1 + k:COL_W1 + k + 1] * x[k:k + 1, :]
    h = jnp.maximum(h, 0.0)                               # (2H, TB)

    # ---- 2-way softmax == sigmoid of logit difference (sublane reduce, no MXU)
    prod = w[:, COL_WDIFF:COL_WDIFF + 1] * h              # (2H, TB)
    d_a = jnp.sum(prod[:H, :], axis=0, keepdims=True) + s_ref[0]   # (1, TB)
    d_d = jnp.sum(prod[H:, :], axis=0, keepdims=True) + s_ref[1]
    pa0 = 1.0 / (1.0 + jnp.exp(-d_a))
    pd0 = 1.0 / (1.0 + jnp.exp(-d_d))
    pa = (pa0, 1.0 - pa0)                                 # attacker slot probs
    pd = (pd0, 1.0 - pd0)                                 # defender slot probs

    # ---- critic first-layer pre-activation shared across all (a, b)
    base = w[:H, COL_CB1:COL_CB1 + 1]                     # (H, 1) broadcasts
    for k in range(ATK_OB_LEN):
        base = base + w[:H, COL_CWB + k:COL_CWB + k + 1] * x[k:k + 1, :]
    for j in range(n_slots):
        base = base + w[:H, COL_CWAP + j:COL_CWAP + j + 1] * pa[j]
        base = base + w[:H, COL_CWDP + j:COL_CWDP + j + 1] * pd[j]

    # ---- expected value over (a, b): weight hidden states BEFORE the single
    #      head contraction (linear head commutes with the per-column weights)
    acc = jnp.zeros_like(base)                            # (H, TB)
    for a in range(n_slots):
        for b in range(n_slots):
            hid_ab = jnp.maximum(
                base + w[:H, COL_CWAA + a:COL_CWAA + a + 1]
                     + w[:H, COL_CWDA + b:COL_CWDA + b + 1], 0.0)
            acc = acc + hid_ab * (pa[a] * pd[b])
    # y = cw2 . acc + cb2   (sum_ab p_a[a] * p_d[b] == 1 exactly)
    y = jnp.sum(w[:H, COL_CW2:COL_CW2 + 1] * acc, axis=0, keepdims=True)
    y_ref[...] = y + s_ref[2]                             # (1, TB) lane-dense


def make_params(key):
    """Deterministic parameter init (PyTorch Linear layout transposed to (in, out))."""
    ks = jax.random.split(key, 8)
    scale = 0.1
    p = {}
    p["aw1"] = scale * jax.random.normal(ks[0], (ATK_OB_LEN, hid_size), jnp.float32)
    p["ab1"] = scale * jax.random.normal(ks[1], (1, hid_size), jnp.float32)
    p["aw2"] = scale * jax.random.normal(ks[2], (hid_size, n_slots), jnp.float32)
    p["ab2"] = scale * jax.random.normal(ks[3], (1, n_slots), jnp.float32)
    p["dw1"] = scale * jax.random.normal(ks[4], (DFD_OB_LEN, hid_size), jnp.float32)
    p["db1"] = scale * jax.random.normal(ks[5], (1, hid_size), jnp.float32)
    p["dw2"] = scale * jax.random.normal(ks[6], (hid_size, n_slots), jnp.float32)
    p["db2"] = scale * jax.random.normal(ks[7], (1, n_slots), jnp.float32)

    kc = jax.random.split(jax.random.fold_in(key, 123), 4)
    cw1 = scale * jax.random.normal(kc[0], (CRIT_IN_LEN, hid_size), jnp.float32)
    p["cb1"] = scale * jax.random.normal(kc[1], (1, hid_size), jnp.float32)
    p["cw2"] = scale * jax.random.normal(kc[2], (hid_size, 1), jnp.float32)
    p["cb2"] = scale * jax.random.normal(kc[3], (1, 1), jnp.float32)

    # Split the critic first-layer weight by input block:
    # [prior, r, atk_type | atk_prob | atk_ac | dfd_prob | dfd_ac]
    o = 0
    p["cwb"] = cw1[o:o + ATK_OB_LEN]; o += ATK_OB_LEN
    p["cwap"] = cw1[o:o + n_slots]; o += n_slots
    p["cwaa"] = cw1[o:o + n_slots]; o += n_slots
    p["cwdp"] = cw1[o:o + n_slots]; o += n_slots
    p["cwda"] = cw1[o:o + n_slots]; o += n_slots
    p["_cw1_full"] = cw1
    return p


def pack_params(p):
    """Pack all parameters into one (128, NC) lane-aligned array + 4 SMEM scalars."""
    H = hid_size
    w = jnp.zeros((2 * H, NC), jnp.float32)
    # stacked actor first layers: rows 0:64 attacker, rows 64:128 defender
    w = w.at[:H, COL_W1:COL_W1 + ATK_OB_LEN].set(p["aw1"].T)
    w = w.at[H:, COL_W1:COL_W1 + DFD_OB_LEN].set(p["dw1"].T)
    w = w.at[:H, COL_B1].set(p["ab1"][0])
    w = w.at[H:, COL_B1].set(p["db1"][0])
    # critic first layer, split by input block (rows 0:64 only)
    w = w.at[:H, COL_CWB:COL_CWB + ATK_OB_LEN].set(p["cwb"].T)
    w = w.at[:H, COL_CB1].set(p["cb1"][0])
    w = w.at[:H, COL_CWAP:COL_CWAP + n_slots].set(p["cwap"].T)
    w = w.at[:H, COL_CWAA:COL_CWAA + n_slots].set(p["cwaa"].T)
    w = w.at[:H, COL_CWDP:COL_CWDP + n_slots].set(p["cwdp"].T)
    w = w.at[:H, COL_CWDA:COL_CWDA + n_slots].set(p["cwda"].T)
    # actor affine2 logit-difference weights (softmax over 2 == sigmoid(l0-l1))
    w = w.at[:H, COL_WDIFF].set(p["aw2"][:, 0] - p["aw2"][:, 1])
    w = w.at[H:, COL_WDIFF].set(p["dw2"][:, 0] - p["dw2"][:, 1])
    # critic head weight
    w = w.at[:H, COL_CW2].set(p["cw2"][:, 0])

    scal = jnp.array([p["ab2"][0, 0] - p["ab2"][0, 1],
                      p["db2"][0, 0] - p["db2"][0, 1],
                      p["cb2"][0, 0], 0.0], jnp.float32)
    return w, scal


def model_forward(prior, r, atk_type, p, max_tile=512):
    B = prior.shape[0]
    tb = 128 * max(1, min((B + 127) // 128, max_tile // 128))   # batch tile (lanes)
    n_blk = (B + tb - 1) // tb
    b_pad = n_blk * tb

    # transposed, zero-padded observation slab: rows 0:5 = [prior, r, atk_type]^T
    x = jnp.concatenate([prior, r, atk_type], axis=1)           # (B, 5)
    x_t = jnp.zeros((8, b_pad), jnp.float32).at[:ATK_OB_LEN, :B].set(x.T)

    wpack, scal = pack_params(p)

    y_t = pl.pallas_call(
        model_kernel,
        out_shape=jax.ShapeDtypeStruct((1, b_pad), jnp.float32),
        grid=(n_blk,),
        in_specs=[
            pl.BlockSpec((8, tb), lambda i: (0, i)),                    # activations
            pl.BlockSpec((2 * hid_size, NC), lambda i: (0, 0)),         # resident weights
            pl.BlockSpec(memory_space=pltpu.MemorySpace.SMEM),          # scalars
        ],
        out_specs=pl.BlockSpec((1, tb), lambda i: (0, i)),
        compiler_params=pltpu.CompilerParams(
            dimension_semantics=("parallel",)),
    )(x_t, wpack, scal)

    return y_t[0, :B].reshape(B, 1)


def model_forward_ref(prior, r, atk_type, p):
    """Pure-JAX reference reproducing the PyTorch Model.forward semantics."""
    hp = jax.lax.Precision.HIGHEST
    dot = lambda a, b: jnp.dot(a, b, precision=hp)

    atk_ob = jnp.concatenate([prior, r, atk_type], axis=1)
    dfd_ob = jnp.concatenate([prior, r], axis=1)

    h_a = jax.nn.relu(dot(atk_ob, p["aw1"]) + p["ab1"])
    atk_prob = jax.nn.softmax(dot(h_a, p["aw2"]) + p["ab2"], axis=-1)
    h_d = jax.nn.relu(dot(dfd_ob, p["dw1"]) + p["db1"])
    dfd_prob = jax.nn.softmax(dot(h_d, p["dw2"]) + p["db2"], axis=-1)

    B = prior.shape[0]
    y = jnp.zeros((B, 1), jnp.float32)
    for a in range(n_slots):
        atk_ac = jnp.zeros((B, n_slots)).at[:, a].set(1.0)
        for b in range(n_slots):
            dfd_ac = jnp.zeros((B, n_slots)).at[:, b].set(1.0)
            crit_in = jnp.concatenate(
                [prior, r, atk_type, atk_prob, atk_ac, dfd_prob, dfd_ac], axis=1)
            c = dot(jax.nn.relu(dot(crit_in, p["_cw1_full"]) + p["cb1"]),
                    p["cw2"]) + p["cb2"]
            y = y + c * atk_prob[:, a:a + 1] * dfd_prob[:, b:b + 1]
    return y


if __name__ == "__main__":
    key = jax.random.PRNGKey(0)
    k_p, k_prior, k_r, k_type = jax.random.split(key, 4)

    B = 8
    params = make_params(k_p)
    prior = jax.nn.softmax(jax.random.normal(k_prior, (B, n_types), jnp.float32), axis=-1)
    r = jax.random.uniform(k_r, (B, n_rounds), jnp.float32)
    atk_type = jax.nn.one_hot(
        jax.random.randint(k_type, (B,), 0, n_types), n_types, dtype=jnp.float32)

    y = jax.block_until_ready(model_forward(prior, r, atk_type, params))
    y_ref = jax.block_until_ready(model_forward_ref(prior, r, atk_type, params))

    assert y.shape == (B, 1)
    assert np.allclose(np.asarray(y), np.asarray(y_ref), rtol=1e-5, atol=1e-5)
    print("KERNEL_OK")
</pallas_src>

<mosaic_0001>
module attributes {stable_mosaic.version = 11 : i64} {
  func.func @model_kernel(%arg0: i32, %arg1: memref<8x128xf32, #tpu.memory_space<vmem>>, %arg2: memref<128x24xf32, #tpu.memory_space<vmem>>, %arg3: memref<4xf32, #tpu.memory_space<smem>>, %arg4: memref<1x128xf32, #tpu.memory_space<vmem>>) attributes {dimension_semantics = [#tpu.dimension_semantics<parallel>], iteration_bounds = array<i64: 1>, scalar_prefetch = 0 : i64, scratch_operands = 0 : i64, tpu.core_type = #tpu.core_type<tc>, window_params = [{transform_indices = @transform_0, window_bounds = array<i64: 8, 128>}, {pipeline_mode = #tpu.pipeline_mode<synchronous>, transform_indices = @transform_1, window_bounds = array<i64: 128, 24>}, {transform_indices = @transform_2, window_bounds = array<i64: 4>}, {transform_indices = @transform_3, window_bounds = array<i64: 1, 128>}]} {
    %c0 = arith.constant 0 : index
    %c0_0 = arith.constant 0 : index
    %0 = vector.load %arg1[%c0, %c0_0] : memref<8x128xf32, #tpu.memory_space<vmem>>, vector<8x128xf32>
    %c0_1 = arith.constant 0 : index
    %c0_2 = arith.constant 0 : index
    %1 = vector.load %arg2[%c0_1, %c0_2] : memref<128x24xf32, #tpu.memory_space<vmem>>, vector<128x24xf32>
    %2 = vector.extract_strided_slice %1 {offsets = [0, 5], sizes = [128, 1], strides = [1, 1]} : vector<128x24xf32> to vector<128x1xf32>
    %3 = vector.extract_strided_slice %1 {offsets = [0, 0], sizes = [128, 1], strides = [1, 1]} : vector<128x24xf32> to vector<128x1xf32>
    %4 = vector.extract_strided_slice %0 {offsets = [0, 0], sizes = [1, 128], strides = [1, 1]} : vector<8x128xf32> to vector<1x128xf32>
    %5 = vector.broadcast %3 : vector<128x1xf32> to vector<128x128xf32>
    %6 = vector.broadcast %4 : vector<1x128xf32> to vector<128x128xf32>
    %7 = arith.mulf %5, %6 : vector<128x128xf32>
    %8 = vector.broadcast %2 : vector<128x1xf32> to vector<128x128xf32>
    %9 = arith.addf %8, %7 : vector<128x128xf32>
    %10 = vector.extract_strided_slice %1 {offsets = [0, 1], sizes = [128, 1], strides = [1, 1]} : vector<128x24xf32> to vector<128x1xf32>
    %11 = vector.extract_strided_slice %0 {offsets = [1, 0], sizes = [1, 128], strides = [1, 1]} : vector<8x128xf32> to vector<1x128xf32>
    %12 = vector.broadcast %10 : vector<128x1xf32> to vector<128x128xf32>
    %13 = vector.broadcast %11 : vector<1x128xf32> to vector<128x128xf32>
    %14 = arith.mulf %12, %13 : vector<128x128xf32>
    %15 = arith.addf %9, %14 : vector<128x128xf32>
    %16 = vector.extract_strided_slice %1 {offsets = [0, 2], sizes = [128, 1], strides = [1, 1]} : vector<128x24xf32> to vector<128x1xf32>
    %17 = vector.extract_strided_slice %0 {offsets = [2, 0], sizes = [1, 128], strides = [1, 1]} : vector<8x128xf32> to vector<1x128xf32>
    %18 = vector.broadcast %16 : vector<128x1xf32> to vector<128x128xf32>
    %19 = vector.broadcast %17 : vector<1x128xf32> to vector<128x128xf32>
    %20 = arith.mulf %18, %19 : vector<128x128xf32>
    %21 = arith.addf %15, %20 : vector<128x128xf32>
    %22 = vector.extract_strided_slice %1 {offsets = [0, 3], sizes = [128, 1], strides = [1, 1]} : vector<128x24xf32> to vector<128x1xf32>
    %23 = vector.extract_strided_slice %0 {offsets = [3, 0], sizes = [1, 128], strides = [1, 1]} : vector<8x128xf32> to vector<1x128xf32>
    %24 = vector.broadcast %22 : vector<128x1xf32> to vector<128x128xf32>
    %25 = vector.broadcast %23 : vector<1x128xf32> to vector<128x128xf32>
    %26 = arith.mulf %24, %25 : vector<128x128xf32>
    %27 = arith.addf %21, %26 : vector<128x128xf32>
    %28 = vector.extract_strided_slice %1 {offsets = [0, 4], sizes = [128, 1], strides = [1, 1]} : vector<128x24xf32> to vector<128x1xf32>
    %29 = vector.extract_strided_slice %0 {offsets = [4, 0], sizes = [1, 128], strides = [1, 1]} : vector<8x128xf32> to vector<1x128xf32>
    %30 = vector.broadcast %28 : vector<128x1xf32> to vector<128x128xf32>
    %31 = vector.broadcast %29 : vector<1x128xf32> to vector<128x128xf32>
    %32 = arith.mulf %30, %31 : vector<128x128xf32>
    %33 = arith.addf %27, %32 : vector<128x128xf32>
    %cst = arith.constant 0.000000e+00 : f32
    %34 = vector.broadcast %cst : f32 to vector<128x128xf32>
    %35 = arith.maximumf %33, %34 : vector<128x128xf32>
    %36 = vector.extract_strided_slice %1 {offsets = [0, 20], sizes = [128, 1], strides = [1, 1]} : vector<128x24xf32> to vector<128x1xf32>
    %37 = vector.broadcast %36 : vector<128x1xf32> to vector<128x128xf32>
    %38 = arith.mulf %37, %35 : vector<128x128xf32>
    %39 = vector.extract_strided_slice %38 {offsets = [0, 0], sizes = [64, 128], strides = [1, 1]} : vector<128x128xf32> to vector<64x128xf32>
    %cst_3 = arith.constant dense<0.000000e+00> : vector<128xf32>
    %40 = vector.multi_reduction <add>, %39, %cst_3 [0] : vector<64x128xf32> to vector<128xf32>
    %41 = vector.shape_cast %40 : vector<128xf32> to vector<1x128xf32>
    %c0_4 = arith.constant 0 : index
    %42 = memref.load %arg3[%c0_4] : memref<4xf32, #tpu.memory_space<smem>>
    %43 = vector.broadcast %42 : f32 to vector<1x128xf32>
    %44 = arith.addf %41, %43 : vector<1x128xf32>
    %45 = vector.extract_strided_slice %38 {offsets = [64, 0], sizes = [64, 128], strides = [1, 1]} : vector<128x128xf32> to vector<64x128xf32>
    %cst_5 = arith.constant dense<0.000000e+00> : vector<128xf32>
    %46 = vector.multi_reduction <add>, %45, %cst_5 [0] : vector<64x128xf32> to vector<128xf32>
    %47 = vector.shape_cast %46 : vector<128xf32> to vector<1x128xf32>
    %c1 = arith.constant 1 : index
    %48 = memref.load %arg3[%c1] : memref<4xf32, #tpu.memory_space<smem>>
    %49 = vector.broadcast %48 : f32 to vector<1x128xf32>
    %50 = arith.addf %47, %49 : vector<1x128xf32>
    %cst_6 = arith.constant 0.000000e+00 : f32
    %51 = vector.broadcast %cst_6 : f32 to vector<1x128xf32>
    %52 = arith.subf %51, %44 : vector<1x128xf32>
    %53 = math.exp %52 : vector<1x128xf32>
    %cst_7 = arith.constant 1.000000e+00 : f32
    %54 = vector.broadcast %cst_7 : f32 to vector<1x128xf32>
    %55 = arith.addf %54, %53 : vector<1x128xf32>
    %cst_8 = arith.constant 1.000000e+00 : f32
    %56 = vector.broadcast %cst_8 : f32 to vector<1x128xf32>
    %57 = arith.divf %56, %55 : vector<1x128xf32>
    %cst_9 = arith.constant 0.000000e+00 : f32
    %58 = vector.broadcast %cst_9 : f32 to vector<1x128xf32>
    %59 = arith.subf %58, %50 : vector<1x128xf32>
    %60 = math.exp %59 : vector<1x128xf32>
    %cst_10 = arith.constant 1.000000e+00 : f32
    %61 = vector.broadcast %cst_10 : f32 to vector<1x128xf32>
    %62 = arith.addf %61, %60 : vector<1x128xf32>
    %cst_11 = arith.constant 1.000000e+00 : f32
    %63 = vector.broadcast %cst_11 : f32 to vector<1x128xf32>
    %64 = arith.divf %63, %62 : vector<1x128xf32>
    %cst_12 = arith.constant 1.000000e+00 : f32
    %65 = vector.broadcast %cst_12 : f32 to vector<1x128xf32>
    %66 = arith.subf %65, %57 : vector<1x128xf32>
    %cst_13 = arith.constant 1.000000e+00 : f32
    %67 = vector.broadcast %cst_13 : f32 to vector<1x128xf32>
    %68 = arith.subf %67, %64 : vector<1x128xf32>
    %69 = vector.extract_strided_slice %1 {offsets = [0, 11], sizes = [64, 1], strides = [1, 1]} : vector<128x24xf32> to vector<64x1xf32>
    %70 = vector.extract_strided_slice %1 {offsets = [0, 6], sizes = [64, 1], strides = [1, 1]} : vector<128x24xf32> to vector<64x1xf32>
    %71 = vector.extract_strided_slice %0 {offsets = [0, 0], sizes = [1, 128], strides = [1, 1]} : vector<8x128xf32> to vector<1x128xf32>
    %72 = vector.broadcast %70 : vector<64x1xf32> to vector<64x128xf32>
    %73 = vector.broadcast %71 : vector<1x128xf32> to vector<64x128xf32>
    %74 = arith.mulf %72, %73 : vector<64x128xf32>
    %75 = vector.broadcast %69 : vector<64x1xf32> to vector<64x128xf32>
    %76 = arith.addf %75, %74 : vector<64x128xf32>
    %77 = vector.extract_strided_slice %1 {offsets = [0, 7], sizes = [64, 1], strides = [1, 1]} : vector<128x24xf32> to vector<64x1xf32>
    %78 = vector.extract_strided_slice %0 {offsets = [1, 0], sizes = [1, 128], strides = [1, 1]} : vector<8x128xf32> to vector<1x128xf32>
    %79 = vector.broadcast %77 : vector<64x1xf32> to vector<64x128xf32>
    %80 = vector.broadcast %78 : vector<1x128xf32> to vector<64x128xf32>
    %81 = arith.mulf %79, %80 : vector<64x128xf32>
    %82 = arith.addf %76, %81 : vector<64x128xf32>
    %83 = vector.extract_strided_slice %1 {offsets = [0, 8], sizes = [64, 1], strides = [1, 1]} : vector<128x24xf32> to vector<64x1xf32>
    %84 = vector.extract_strided_slice %0 {offsets = [2, 0], sizes = [1, 128], strides = [1, 1]} : vector<8x128xf32> to vector<1x128xf32>
    %85 = vector.broadcast %83 : vector<64x1xf32> to vector<64x128xf32>
    %86 = vector.broadcast %84 : vector<1x128xf32> to vector<64x128xf32>
    %87 = arith.mulf %85, %86 : vector<64x128xf32>
    %88 = arith.addf %82, %87 : vector<64x128xf32>
    %89 = vector.extract_strided_slice %1 {offsets = [0, 9], sizes = [64, 1], strides = [1, 1]} : vector<128x24xf32> to vector<64x1xf32>
    %90 = vector.extract_strided_slice %0 {offsets = [3, 0], sizes = [1, 128], strides = [1, 1]} : vector<8x128xf32> to vector<1x128xf32>
    %91 = vector.broadcast %89 : vector<64x1xf32> to vector<64x128xf32>
    %92 = vector.broadcast %90 : vector<1x128xf32> to vector<64x128xf32>
    %93 = arith.mulf %91, %92 : vector<64x128xf32>
    %94 = arith.addf %88, %93 : vector<64x128xf32>
    %95 = vector.extract_strided_slice %1 {offsets = [0, 10], sizes = [64, 1], strides = [1, 1]} : vector<128x24xf32> to vector<64x1xf32>
    %96 = vector.extract_strided_slice %0 {offsets = [4, 0], sizes = [1, 128], strides = [1, 1]} : vector<8x128xf32> to vector<1x128xf32>
    %97 = vector.broadcast %95 : vector<64x1xf32> to vector<64x128xf32>
    %98 = vector.broadcast %96 : vector<1x128xf32> to vector<64x128xf32>
    %99 = arith.mulf %97, %98 : vector<64x128xf32>
    %100 = arith.addf %94, %99 : vector<64x128xf32>
    %101 = vector.extract_strided_slice %1 {offsets = [0, 12], sizes = [64, 1], strides = [1, 1]} : vector<128x24xf32> to vector<64x1xf32>
    %102 = vector.broadcast %101 : vector<64x1xf32> to vector<64x128xf32>
    %103 = vector.broadcast %57 : vector<1x128xf32> to vector<64x128xf32>
    %104 = arith.mulf %102, %103 : vector<64x128xf32>
    %105 = arith.addf %100, %104 : vector<64x128xf32>
    %106 = vector.extract_strided_slice %1 {offsets = [0, 16], sizes = [64, 1], strides = [1, 1]} : vector<128x24xf32> to vector<64x1xf32>
    %107 = vector.broadcast %106 : vector<64x1xf32> to vector<64x128xf32>
    %108 = vector.broadcast %64 : vector<1x128xf32> to vector<64x128xf32>
    %109 = arith.mulf %107, %108 : vector<64x128xf32>
    %110 = arith.addf %105, %109 : vector<64x128xf32>
    %111 = vector.extract_strided_slice %1 {offsets = [0, 13], sizes = [64, 1], strides = [1, 1]} : vector<128x24xf32> to vector<64x1xf32>
    %112 = vector.broadcast %111 : vector<64x1xf32> to vector<64x128xf32>
    %113 = vector.broadcast %66 : vector<1x128xf32> to vector<64x128xf32>
    %114 = arith.mulf %112, %113 : vector<64x128xf32>
    %115 = arith.addf %110, %114 : vector<64x128xf32>
    %116 = vector.extract_strided_slice %1 {offsets = [0, 17], sizes = [64, 1], strides = [1, 1]} : vector<128x24xf32> to vector<64x1xf32>
    %117 = vector.broadcast %116 : vector<64x1xf32> to vector<64x128xf32>
    %118 = vector.broadcast %68 : vector<1x128xf32> to vector<64x128xf32>
    %119 = arith.mulf %117, %118 : vector<64x128xf32>
    %120 = arith.addf %115, %119 : vector<64x128xf32>
    %cst_14 = arith.constant 0.000000e+00 : f32
    %121 = vector.broadcast %cst_14 : f32 to vector<64x128xf32>
    %122 = vector.extract_strided_slice %1 {offsets = [0, 14], sizes = [64, 1], strides = [1, 1]} : vector<128x24xf32> to vector<64x1xf32>
    %123 = vector.broadcast %122 : vector<64x1xf32> to vector<64x128xf32>
    %124 = arith.addf %120, %123 : vector<64x128xf32>
    %125 = vector.extract_strided_slice %1 {offsets = [0, 18], sizes = [64, 1], strides = [1, 1]} : vector<128x24xf32> to vector<64x1xf32>
    %126 = vector.broadcast %125 : vector<64x1xf32> to vector<64x128xf32>
    %127 = arith.addf %124, %126 : vector<64x128xf32>
    %cst_15 = arith.constant 0.000000e+00 : f32
    %128 = vector.broadcast %cst_15 : f32 to vector<64x128xf32>
    %129 = arith.maximumf %127, %128 : vector<64x128xf32>
    %130 = arith.mulf %57, %64 : vector<1x128xf32>
    %131 = vector.broadcast %130 : vector<1x128xf32> to vector<64x128xf32>
    %132 = arith.mulf %129, %131 : vector<64x128xf32>
    %133 = arith.addf %121, %132 : vector<64x128xf32>
    %134 = vector.extract_strided_slice %1 {offsets = [0, 14], sizes = [64, 1], strides = [1, 1]} : vector<128x24xf32> to vector<64x1xf32>
    %135 = vector.broadcast %134 : vector<64x1xf32> to vector<64x128xf32>
    %136 = arith.addf %120, %135 : vector<64x128xf32>
    %137 = vector.extract_strided_slice %1 {offsets = [0, 19], sizes = [64, 1], strides = [1, 1]} : vector<128x24xf32> to vector<64x1xf32>
    %138 = vector.broadcast %137 : vector<64x1xf32> to vector<64x128xf32>
    %139 = arith.addf %136, %138 : vector<64x128xf32>
    %cst_16 = arith.constant 0.000000e+00 : f32
    %140 = vector.broadcast %cst_16 : f32 to vector<64x128xf32>
    %141 = arith.maximumf %139, %140 : vector<64x128xf32>
    %142 = arith.mulf %57, %68 : vector<1x128xf32>
    %143 = vector.broadcast %142 : vector<1x128xf32> to vector<64x128xf32>
    %144 = arith.mulf %141, %143 : vector<64x128xf32>
    %145 = arith.addf %133, %144 : vector<64x128xf32>
    %146 = vector.extract_strided_slice %1 {offsets = [0, 15], sizes = [64, 1], strides = [1, 1]} : vector<128x24xf32> to vector<64x1xf32>
    %147 = vector.broadcast %146 : vector<64x1xf32> to vector<64x128xf32>
    %148 = arith.addf %120, %147 : vector<64x128xf32>
    %149 = vector.extract_strided_slice %1 {offsets = [0, 18], sizes = [64, 1], strides = [1, 1]} : vector<128x24xf32> to vector<64x1xf32>
    %150 = vector.broadcast %149 : vector<64x1xf32> to vector<64x128xf32>
    %151 = arith.addf %148, %150 : vector<64x128xf32>
    %cst_17 = arith.constant 0.000000e+00 : f32
    %152 = vector.broadcast %cst_17 : f32 to vector<64x128xf32>
    %153 = arith.maximumf %151, %152 : vector<64x128xf32>
    %154 = arith.mulf %66, %64 : vector<1x128xf32>
    %155 = vector.broadcast %154 : vector<1x128xf32> to vector<64x128xf32>
    %156 = arith.mulf %153, %155 : vector<64x128xf32>
    %157 = arith.addf %145, %156 : vector<64x128xf32>
    %158 = vector.extract_strided_slice %1 {offsets = [0, 15], sizes = [64, 1], strides = [1, 1]} : vector<128x24xf32> to vector<64x1xf32>
    %159 = vector.broadcast %158 : vector<64x1xf32> to vector<64x128xf32>
    %160 = arith.addf %120, %159 : vector<64x128xf32>
    %161 = vector.extract_strided_slice %1 {offsets = [0, 19], sizes = [64, 1], strides = [1, 1]} : vector<128x24xf32> to vector<64x1xf32>
    %162 = vector.broadcast %161 : vector<64x1xf32> to vector<64x128xf32>
    %163 = arith.addf %160, %162 : vector<64x128xf32>
    %cst_18 = arith.constant 0.000000e+00 : f32
    %164 = vector.broadcast %cst_18 : f32 to vector<64x128xf32>
    %165 = arith.maximumf %163, %164 : vector<64x128xf32>
    %166 = arith.mulf %66, %68 : vector<1x128xf32>
    %167 = vector.broadcast %166 : vector<1x128xf32> to vector<64x128xf32>
    %168 = arith.mulf %165, %167 : vector<64x128xf32>
    %169 = arith.addf %157, %168 : vector<64x128xf32>
    %170 = vector.extract_strided_slice %1 {offsets = [0, 21], sizes = [64, 1], strides = [1, 1]} : vector<128x24xf32> to vector<64x1xf32>
    %171 = vector.broadcast %170 : vector<64x1xf32> to vector<64x128xf32>
    %172 = arith.mulf %171, %169 : vector<64x128xf32>
    %cst_19 = arith.constant dense<0.000000e+00> : vector<128xf32>
    %173 = vector.multi_reduction <add>, %172, %cst_19 [0] : vector<64x128xf32> to vector<128xf32>
    %174 = vector.shape_cast %173 : vector<128xf32> to vector<1x128xf32>
    %c2 = arith.constant 2 : index
    %175 = memref.load %arg3[%c2] : memref<4xf32, #tpu.memory_space<smem>>
    %176 = vector.broadcast %175 : f32 to vector<1x128xf32>
    %177 = arith.addf %174, %176 : vector<1x128xf32>
    %c0_20 = arith.constant 0 : index
    %c0_21 = arith.constant 0 : index
    %178 = vector.load %arg4[%c0_20, %c0_21] : memref<1x128xf32, #tpu.memory_space<vmem>>, vector<1x128xf32>
    tpu.vector_store %arg4[%c0_20, %c0_21], %177 {strides = array<i32>} : memref<1x128xf32, #tpu.memory_space<vmem>>, vector<1x128xf32>,
    return
  }
  func.func @transform_0(%arg0: i32) -> (i32, i32) {
    %c0_i32 = arith.constant 0 : i32
    %c0_i32_0 = arith.constant 0 : i32
    return %c0_i32, %arg0 : i32, i32
  }
  func.func @transform_1(%arg0: i32) -> (i32, i32) {
    %c0_i32 = arith.constant 0 : i32
    %c0_i32_0 = arith.constant 0 : i32
    %c0_i32_1 = arith.constant 0 : i32
    return %c0_i32, %c0_i32_0 : i32, i32
  }
  func.func @transform_2(%arg0: i32) -> i32 {
    %c0_i32 = arith.constant 0 : i32
    %c0_i32_0 = arith.constant 0 : i32
    return %c0_i32 : i32
  }
  func.func @transform_3(%arg0: i32) -> (i32, i32) {
    %c0_i32 = arith.constant 0 : i32
    %c0_i32_0 = arith.constant 0 : i32
    return %c0_i32, %arg0 : i32, i32
  }
}

</mosaic_0001>

<bundles_post_ra>
// kernel: tpu_custom_call.1
= control target key start
LH: loop header
LB: loop body
LE: loop exit
PB: predicated region body
PF: predicated region fallthrough
CT: control target
= control target key end

     0   :  { %8 = vsyncpa [#allocation4], 0  ;;  %s2919_s0 = inlined_call_operand.vmem [shape: f32[8,128], index: 0, kind: input, shape index: {}]   ;;  %s2920_s1 = inlined_call_operand.vmem [shape: f32[128,24], index: 1, kind: input, shape index: {}]   ;;  %s2921_s2 = inlined_call_operand.vmem [shape: f32[4], index: 2, kind: input, shape index: {}]   ;;  %s2922_s3 = inlined_call_operand.hbm [shape: f32[1,128], index: 3, kind: output, shape index: {}]  }
   0x1   :  { %9 = vsyncpa [#allocation3], 0  ;;  %s20_s14 = sshll.u32 %s2921_s2, 4  ;;  %s21_s14 = int_to_ptr.vmem [resolvable:$true] %s20_s14 }
   0x2   :  { %s1672_s15 = scalar_lea.vmem %s21_s14, 16  ;;  %p1677_p1 = scmp.lt.s32.totalorder %s21_s14, %s21_s14 }
   0x3   :  { %p1673_p0 = scmp.ne.s32.totalorder %s21_s14, %s1672_s15  ;;  %p1678_p2 = scmp.lt.s32.totalorder %s1672_s15, %s1672_s15 }
   0x5   :  { %p1679_p3 = por %p1678_p2, %p1677_p1 }
   0x7   :  { %p1680_p4 = pnand %p1679_p3, %p1673_p0 }
   0x9   :  { %1683 = shalt.err (!%p1680_p4)
}
   0xa   :  { %s1708_s16 = smov [#allocation2]  }
   0xb   :  { %23 = dma.vmem_to_smem %s21_s14, 16, %s1708_s16, [#allocation4]  }
   0xc   :  { %1704 = dma.done.wait [#allocation4], 16  }
   0xd   :  { %1705 = vsyncadd [#allocation4], 4294967280 }
   0xe   :  { %27 = sfence }
   0xf   :  { %v1758_v0 = vld [vmem:[%s2920_s1 + $0x10] sm:$0xff]  ;;  %v1763_v1 = vld [vmem:[%s2920_s1] sm:$0xff]  ;;  %v1709_v2 = vmov 0   ;;  %v1770_v3 = vld [vmem:[%s2920_s1 + $0x18] sm:$0xff]  ;;  %v1710_v17 = vmov 5   ;;  %v1711_v18 = vmov 1  }
  0x10   :  { %2934 = vst [vmem:[#allocation8_spill] sm:$0xff] %v1763_v1  ;;  %1606 = vset.pattern.permute.xlu1 %v1709_v2  ;;  %1605 = vset.pattern.permute.xlu0 %v1709_v2  ;;  %v1775_v4 = vld [vmem:[%s2920_s1 + $0x8] sm:$0xff]  ;;  %v1787_v6 = vld [vmem:[%s2920_s1 + $0x20] sm:$0xff]  ;;  %v1794_v7 = vld [vmem:[%s2920_s1 + $0x38] sm:$0xff]  ;;  %v1712_v19 = vmov 2   ;;  %v1713_v23 = vmov 3  }
  0x11   :  { %57 = vperm.xlu1 %1606, %v1758_v0   ;;  %47 = vperm.xlu0 %1605, %v1763_v1   ;;  %2935 = vst [vmem:[#allocation9_spill] sm:$0xff] %v1775_v4  ;;  %v1782_v5 = vld [vmem:[%s2920_s1 + $0x28] sm:$0xff]  ;;  %2936 = vst [vmem:[#allocation10_spill] sm:$0xff] %v1787_v6  ;;  %v1799_v8 = vld [vmem:[%s2920_s1 + $0x30] sm:$0xff]  ;;  %v1714_v38 = vmov 4   ;;  %v1715_v55 = vmov 20  }
  0x12   :  { %2937 = vst [vmem:[#allocation11_spill] sm:$0xff] %v1799_v8  ;;  %v1806_v9 = vld [vmem:[%s2920_s1 + $0x48] sm:$0xff]  ;;  %v1811_v10 = vld [vmem:[%s2920_s1 + $0x40] sm:$0xff]  ;;  %v1818_v11 = vld [vmem:[%s2920_s1 + $0x58] sm:$0xff]  ;;  %s2578_s10 = sld [smem:[#allocation2]]  ;;  %s1731_s12 = smov [#allocation5]  }
  0x13   :  { %v1823_v12 = vld [vmem:[%s2920_s1 + $0x50] sm:$0xff]  ;;  %v1830_v13 = vld [vmem:[%s2920_s1 + $0x68] sm:$0xff]  ;;  %v1835_v14 = vld [vmem:[%s2920_s1 + $0x60] sm:$0xff]  ;;  %s1580_s11 = sld [smem:[#allocation2 + $0x2]]  ;;  %s1570_s13 = sshll.u32 %s1731_s12, 4  ;;  %s1571_s13 = int_to_ptr.vmem [resolvable:$true] %s1570_s13 }
  0x14   :  { %v1842_v15 = vld [vmem:[%s2920_s1 + $0x78] sm:$0xff]  ;;  %v1847_v16 = vld [vmem:[%s2920_s1 + $0x70] sm:$0xff]  ;;  %s1684_s14 = scalar_lea.vmem %s1571_s13, 16  ;;  %s1688_s15 = scalar_lea.vmem %s1571_s13, 32 }
  0x15   :  { %62 = vperm.xlu1 %1606, %v1770_v3   ;;  %52 = vperm.xlu0 %1605, %v1775_v4   ;;  %p1685_p5 = scmp.ne.s32.totalorder %s1571_s13, %s1684_s14  ;;  %p1689_p6 = scmp.lt.s32.totalorder %s1571_s13, %s1571_s13 }
  0x16   :  { %p1690_p7 = scmp.lt.s32.totalorder %s1688_s15, %s1684_s14 }
  0x18   :  { %p1691_p8 = por %p1690_p7, %p1689_p6 }
  0x19   :  { %72 = vperm.xlu1 %1606, %v1782_v5   ;;  %67 = vperm.xlu0 %1605, %v1787_v6  }
  0x1a   :  { %p1692_p9 = pnand %p1691_p8, %p1685_p5 }
  0x1d   :  { %82 = vperm.xlu1 %1606, %v1794_v7   ;;  %77 = vperm.xlu0 %1605, %v1799_v8  }
  0x21   :  { %92 = vperm.xlu1 %1606, %v1806_v9   ;;  %87 = vperm.xlu0 %1605, %v1811_v10  }
  0x25   :  { %102 = vperm.xlu1 %1606, %v1818_v11   ;;  %97 = vperm.xlu0 %1605, %v1823_v12  }
  0x29   :  { %112 = vperm.xlu1 %1606, %v1830_v13   ;;  %107 = vperm.xlu0 %1605, %v1835_v14  }
  0x2d   :  { %122 = vperm.xlu1 %1606, %v1842_v15   ;;  %117 = vperm.xlu0 %1605, %v1847_v16  }
  0x31   :  { %1608 = vset.pattern.permute.xlu1 %v1710_v17  ;;  %1607 = vset.pattern.permute.xlu0 %v1710_v17 }
  0x32   :  { %150 = vperm.xlu1 %1608, %v1775_v4   ;;  %146 = vperm.xlu0 %1607, %v1763_v1  }
  0x36   :  { %154 = vperm.xlu1 %1608, %v1758_v0   ;;  %158 = vperm.xlu0 %1607, %v1770_v3  }
  0x3a   :  { %162 = vperm.xlu1 %1608, %v1787_v6   ;;  %166 = vperm.xlu0 %1607, %v1782_v5  }
  0x3e   :  { %170 = vperm.xlu1 %1608, %v1799_v8   ;;  %174 = vperm.xlu0 %1607, %v1794_v7  }
  0x42   :  { %178 = vperm.xlu1 %1608, %v1811_v10   ;;  %182 = vperm.xlu0 %1607, %v1806_v9  }
  0x46   :  { %186 = vperm.xlu1 %1608, %v1823_v12   ;;  %190 = vperm.xlu0 %1607, %v1818_v11  }
  0x4a   :  { %194 = vperm.xlu1 %1608, %v1835_v14   ;;  %198 = vperm.xlu0 %1607, %v1830_v13  }
  0x4e   :  { %202 = vperm.xlu1 %1608, %v1847_v16   ;;  %206 = vperm.xlu0 %1607, %v1842_v15  }
  0x52   :  { %1609 = vset.pattern.permute.xlu1 %v1711_v18  ;;  %1610 = vset.pattern.permute.xlu0 %v1711_v18 }
  0x53   :  { %226 = vperm.xlu1 %1609, %v1763_v1   ;;  %230 = vperm.xlu0 %1610, %v1775_v4  }
  0x57   :  { %234 = vperm.xlu1 %1609, %v1758_v0   ;;  %242 = vperm.xlu0 %1610, %v1787_v6  }
  0x5b   :  { %238 = vperm.xlu1 %1609, %v1770_v3   ;;  %250 = vperm.xlu0 %1610, %v1799_v8  }
  0x5f   :  { %246 = vperm.xlu1 %1609, %v1782_v5   ;;  %258 = vperm.xlu0 %1610, %v1811_v10  }
  0x63   :  { %254 = vperm.xlu1 %1609, %v1794_v7   ;;  %266 = vperm.xlu0 %1610, %v1823_v12  }
  0x67   :  { %262 = vperm.xlu1 %1609, %v1806_v9   ;;  %274 = vperm.xlu0 %1610, %v1835_v14  }
  0x6b   :  { %270 = vperm.xlu1 %1609, %v1818_v11   ;;  %282 = vperm.xlu0 %1610, %v1847_v16  }
  0x6f   :  { %278 = vperm.xlu1 %1609, %v1830_v13   ;;  %1611 = vset.pattern.permute.xlu0 %v1712_v19 }
  0x70   :  { %326 = vperm.xlu0 %1611, %v1763_v1  }
  0x73   :  { %286 = vperm.xlu1 %1609, %v1842_v15  }
  0x74   :  { %338 = vperm.xlu0 %1611, %v1770_v3  }
  0x77   :  { %1612 = vset.pattern.permute.xlu1 %v1712_v19 }
  0x78   :  { %330 = vperm.xlu1 %1612, %v1775_v4   ;;  %346 = vperm.xlu0 %1611, %v1782_v5  }
  0x7c   :  { %334 = vperm.xlu1 %1612, %v1758_v0   ;;  %354 = vperm.xlu0 %1611, %v1794_v7  }
  0x80   :  { %342 = vperm.xlu1 %1612, %v1787_v6   ;;  %362 = vperm.xlu0 %1611, %v1806_v9  }
  0x84   :  { %350 = vperm.xlu1 %1612, %v1799_v8   ;;  %370 = vperm.xlu0 %1611, %v1818_v11  }
  0x88   :  { %358 = vperm.xlu1 %1612, %v1811_v10   ;;  %378 = vperm.xlu0 %1611, %v1830_v13  }
  0x8c   :  { %v1895_v20 = vpop.permute.xlu1 %57  ;;  %366 = vperm.xlu1 %1612, %v1823_v12   ;;  %386 = vperm.xlu0 %1611, %v1842_v15   ;;  %v1899_v21 = vpop.permute.xlu0 %47 }
  0x90   :  { %v1901_v22 = vpop.permute.xlu1 %62  ;;  %374 = vperm.xlu1 %1612, %v1835_v14   ;;  %1614 = vset.pattern.permute.xlu0 %v1713_v23  ;;  %v1904_v24 = vpop.permute.xlu0 %52 }
  0x91   :  { %430 = vperm.xlu0 %1614, %v1775_v4  }
  0x94   :  { %v1907_v25 = vpop.permute.xlu1 %72  ;;  %382 = vperm.xlu1 %1612, %v1847_v16   ;;  %v1910_v26 = vpop.permute.xlu0 %67 }
  0x95   :  { %442 = vperm.xlu0 %1614, %v1787_v6  }
  0x98   :  { %v1913_v27 = vpop.permute.xlu1 %82  ;;  %1613 = vset.pattern.permute.xlu1 %v1713_v23  ;;  %v1915_v28 = vpop.permute.xlu0 %77 }
  0x99   :  { %426 = vperm.xlu1 %1613, %v1763_v1   ;;  %450 = vperm.xlu0 %1614, %v1799_v8  }
  0x9c   :  { %v1919_v29 = vpop.permute.xlu1 %92  ;;  %v1921_v30 = vpop.permute.xlu0 %87 }
  0x9d   :  { %434 = vperm.xlu1 %1613, %v1758_v0   ;;  %458 = vperm.xlu0 %1614, %v1811_v10  }
  0xa0   :  { %v1925_v31 = vpop.permute.xlu1 %102  ;;  %v1927_v32 = vpop.permute.xlu0 %97 }
  0xa1   :  { %438 = vperm.xlu1 %1613, %v1770_v3   ;;  %466 = vperm.xlu0 %1614, %v1823_v12  }
  0xa4   :  { %v1931_v33 = vpop.permute.xlu1 %112  ;;  %v1933_v34 = vpop.permute.xlu0 %107 }
  0xa5   :  { %446 = vperm.xlu1 %1613, %v1782_v5   ;;  %474 = vperm.xlu0 %1614, %v1835_v14  }
  0xa8   :  { %v1937_v35 = vpop.permute.xlu1 %122  ;;  %v1939_v36 = vpop.permute.xlu0 %117 }
  0xa9   :  { %2938 = vst [vmem:[#allocation12_spill] sm:$0xff] %v1939_v36  ;;  %454 = vperm.xlu1 %1613, %v1794_v7   ;;  %482 = vperm.xlu0 %1614, %v1847_v16  }
  0xad   :  { %v1943_v37 = vpop.permute.xlu1 %150  ;;  %462 = vperm.xlu1 %1613, %v1806_v9   ;;  %1615 = vset.pattern.permute.xlu0 %v1714_v38  ;;  %v1946_v39 = vpop.permute.xlu0 %146 }
  0xae   :  { %526 = vperm.xlu0 %1615, %v1763_v1  }
  0xb1   :  { %v1949_v40 = vpop.permute.xlu1 %154  ;;  %470 = vperm.xlu1 %1613, %v1818_v11   ;;  %v1952_v41 = vpop.permute.xlu0 %158 }
  0xb2   :  { %538 = vperm.xlu0 %1615, %v1770_v3  }
  0xb5   :  { %v1955_v42 = vpop.permute.xlu1 %162  ;;  %478 = vperm.xlu1 %1613, %v1830_v13   ;;  %v1958_v43 = vpop.permute.xlu0 %166 }
  0xb6   :  { %546 = vperm.xlu0 %1615, %v1782_v5  }
  0xb9   :  { %v1961_v44 = vpop.permute.xlu1 %170  ;;  %486 = vperm.xlu1 %1613, %v1842_v15   ;;  %v1964_v45 = vpop.permute.xlu0 %174 }
  0xba   :  { %554 = vperm.xlu0 %1615, %v1794_v7  }
  0xbd   :  { %v1967_v46 = vpop.permute.xlu1 %178  ;;  %1616 = vset.pattern.permute.xlu1 %v1714_v38  ;;  %v1969_v47 = vpop.permute.xlu0 %182 }
  0xbe   :  { %530 = vperm.xlu1 %1616, %v1775_v4   ;;  %562 = vperm.xlu0 %1615, %v1806_v9  }
  0xc1   :  { %v1973_v48 = vpop.permute.xlu1 %186  ;;  %v1975_v49 = vpop.permute.xlu0 %190 }
  0xc2   :  { %2939 = vst [vmem:[#allocation13_spill] sm:$0xff] %v1975_v49  ;;  %534 = vperm.xlu1 %1616, %v1758_v0   ;;  %570 = vperm.xlu0 %1615, %v1818_v11  }
  0xc5   :  { %v1979_v50 = vpop.permute.xlu1 %194  ;;  %v1981_v51 = vpop.permute.xlu0 %198 }
  0xc6   :  { %2940 = vst [vmem:[#allocation14_spill] sm:$0xff] %v1979_v50  ;;  %2941 = vst [vmem:[#allocation15_spill] sm:$0xff] %v1981_v51  ;;  %542 = vperm.xlu1 %1616, %v1787_v6   ;;  %578 = vperm.xlu0 %1615, %v1830_v13  }
  0xc9   :  { %v1985_v52 = vpop.permute.xlu1 %202  ;;  %v1987_v53 = vpop.permute.xlu0 %206 }
  0xca   :  { %2942 = vst [vmem:[#allocation16_spill] sm:$0xff] %v1985_v52  ;;  %2943 = vst [vmem:[#allocation17_spill] sm:$0xff] %v1987_v53  ;;  %550 = vperm.xlu1 %1616, %v1799_v8   ;;  %586 = vperm.xlu0 %1615, %v1842_v15  }
  0xce   :  { %558 = vperm.xlu1 %1616, %v1811_v10   ;;  %v1992_v54 = vpop.permute.xlu1 %226  ;;  %1618 = vset.pattern.permute.xlu0 %v1715_v55  ;;  %v1994_v56 = vpop.permute.xlu0 %230 }
  0xcf   :  { %646 = vperm.xlu0 %1618, %v1775_v4  }
  0xd2   :  { %566 = vperm.xlu1 %1616, %v1823_v12   ;;  %v1998_v57 = vpop.permute.xlu1 %234  ;;  %v2000_v58 = vpop.permute.xlu0 %242 }
  0xd3   :  { %658 = vperm.xlu0 %1618, %v1787_v6  }
  0xd6   :  { %574 = vperm.xlu1 %1616, %v1835_v14   ;;  %v2004_v59 = vpop.permute.xlu1 %238  ;;  %v2006_v60 = vpop.permute.xlu0 %250 }
  0xd7   :  { %666 = vperm.xlu0 %1618, %v1799_v8  }
  0xda   :  { %582 = vperm.xlu1 %1616, %v1847_v16   ;;  %v2010_v61 = vpop.permute.xlu1 %246  ;;  %v2012_v62 = vpop.permute.xlu0 %258 }
  0xdb   :  { %674 = vperm.xlu0 %1618, %v1811_v10  }
  0xde   :  { %1617 = vset.pattern.permute.xlu1 %v1715_v55  ;;  %v2015_v63 = vpop.permute.xlu1 %254  ;;  %v2017_v2 = vpop.permute.xlu0 %266 }
  0xdf   :  { %2944 = vst [vmem:[#allocation18_spill] sm:$0xff] %v2015_v63  ;;  %2945 = vst [vmem:[#allocation19_spill] sm:$0xff] %v2017_v2  ;;  %642 = vperm.xlu1 %1617, %v1763_v1   ;;  %682 = vperm.xlu0 %1618, %v1823_v12   ;;  %v1716_v12 = vmov 6  }
  0xe2   :  { %v2021_v17 = vpop.permute.xlu1 %262  ;;  %v2023_v18 = vpop.permute.xlu0 %274 }
  0xe3   :  { %2946 = vst [vmem:[#allocation20_spill] sm:$0xff] %v2021_v17  ;;  %2947 = vst [vmem:[#allocation21_spill] sm:$0xff] %v2023_v18  ;;  %650 = vperm.xlu1 %1617, %v1758_v0   ;;  %690 = vperm.xlu0 %1618, %v1835_v14  }
  0xe6   :  { %v2027_v19 = vpop.permute.xlu1 %270  ;;  %v2029_v10 = vpop.permute.xlu0 %282 }
  0xe7   :  { %2948 = vst [vmem:[#allocation22_spill] sm:$0xff] %v2027_v19  ;;  %2949 = vst [vmem:[#allocation23_spill] sm:$0xff] %v2029_v10  ;;  %654 = vperm.xlu1 %1617, %v1770_v3   ;;  %698 = vperm.xlu0 %1618, %v1847_v16  }
  0xea   :  { %v2033_v23 = vpop.permute.xlu1 %278 }
  0xeb   :  { %2950 = vst [vmem:[#allocation24_spill] sm:$0xff] %v2033_v23  ;;  %662 = vperm.xlu1 %1617, %v1782_v5   ;;  %1619 = vset.pattern.permute.xlu0 %v1716_v12  ;;  %v2036_v38 = vpop.permute.xlu0 %326 }
  0xec   :  { %768 = vperm.xlu0 %1619, %v1763_v1  }
  0xee   :  { %v2039_v55 = vpop.permute.xlu1 %286 }
  0xef   :  { %2951 = vst [vmem:[#allocation25_spill] sm:$0xff] %v2039_v55  ;;  %670 = vperm.xlu1 %1617, %v1794_v7   ;;  %v2042_v14 = vpop.permute.xlu0 %338 }
  0xf0   :  { %780 = vperm.xlu0 %1619, %v1770_v3  }
  0xf3   :  { %678 = vperm.xlu1 %1617, %v1806_v9   ;;  %v2046_v16 = vpop.permute.xlu1 %330  ;;  %v2048_v53 = vpop.permute.xlu0 %346  ;;  %v1717_v9 = vmov 11  }
  0xf4   :  { %2952 = vst [vmem:[#allocation26_spill] sm:$0xff] %v2048_v53  ;;  %788 = vperm.xlu0 %1619, %v1782_v5  }
  0xf7   :  { %686 = vperm.xlu1 %1617, %v1818_v11   ;;  %v2052_v52 = vpop.permute.xlu1 %334  ;;  %v2054_v10 = vpop.permute.xlu0 %354 }
  0xf8   :  { %2953 = vst [vmem:[#allocation27_spill] sm:$0xff] %v2054_v10  ;;  %796 = vperm.xlu0 %1619, %v1794_v7  }
  0xfb   :  { %694 = vperm.xlu1 %1617, %v1830_v13   ;;  %v2058_v55 = vpop.permute.xlu1 %342  ;;  %v2060_v23 = vpop.permute.xlu0 %362 }
  0xfc   :  { %2954 = vst [vmem:[#allocation28_spill] sm:$0xff] %v2058_v55  ;;  %2955 = vst [vmem:[#allocation29_spill] sm:$0xff] %v2060_v23  ;;  %1622 = vset.pattern.permute.xlu0 %v1717_v9 }
  0xfd   :  { %812 = vperm.xlu0 %1622, %v1775_v4  }
  0xff   :  { %702 = vperm.xlu1 %1617, %v1842_v15   ;;  %v2064_v51 = vpop.permute.xlu1 %350  ;;  %v2066_v11 = vpop.permute.xlu0 %370  ;;  %v1718_v15 = vmov 7  }
 0x100   :  { %2956 = vst [vmem:[#allocation30_spill] sm:$0xff] %v2064_v51  ;;  %2957 = vst [vmem:[#allocation31_spill] sm:$0xff] %v2066_v11 }
 0x101   :  { %824 = vperm.xlu0 %1622, %v1787_v6  }
 0x103   :  { %1620 = vset.pattern.permute.xlu1 %v1716_v12  ;;  %v2069_v36 = vpop.permute.xlu1 %358  ;;  %v2071_v13 = vpop.permute.xlu0 %378 }
 0x104   :  { %2958 = vst [vmem:[#allocation32_spill] sm:$0xff] %v2069_v36  ;;  %2959 = vst [vmem:[#allocation33_spill] sm:$0xff] %v2071_v13  ;;  %772 = vperm.xlu1 %1620, %v1775_v4  }
 0x105   :  { %832 = vperm.xlu0 %1622, %v1799_v8  }
 0x107   :  { %v2075_v23 = vpop.permute.xlu1 %366  ;;  %v2077_v18 = vpop.permute.xlu0 %386 }
 0x108   :  { %2960 = vst [vmem:[#allocation34_spill] sm:$0xff] %v2075_v23  ;;  %2961 = vst [vmem:[#allocation35_spill] sm:$0xff] %v2077_v18  ;;  %776 = vperm.xlu1 %1620, %v1758_v0  }
 0x109   :  { %1623 = vset.pattern.permute.xlu0 %v1718_v15 }
 0x10a   :  { %848 = vperm.xlu0 %1623, %v1763_v1  }
 0x10b   :  { %v2081_v11 = vpop.permute.xlu1 %374 }
 0x10c   :  { %2962 = vst [vmem:[#allocation36_spill] sm:$0xff] %v2081_v11  ;;  %784 = vperm.xlu1 %1620, %v1787_v6   ;;  %v2084_v12 = vpop.permute.xlu0 %430 }
 0x10e   :  { %860 = vperm.xlu0 %1623, %v1770_v3  }
 0x10f   :  { %v2087_v13 = vpop.permute.xlu1 %382 }
 0x110   :  { %2963 = vst [vmem:[#allocation37_spill] sm:$0xff] %v2087_v13  ;;  %792 = vperm.xlu1 %1620, %v1799_v8   ;;  %v2090_v23 = vpop.permute.xlu0 %442  ;;  %v1719_v13 = vmov 8  }
 0x111   :  { %2964 = vst [vmem:[#allocation38_spill] sm:$0xff] %v2090_v23  ;;  %v1720_v23 = vmov 9  }
 0x112   :  { %868 = vperm.xlu0 %1623, %v1782_v5  }
 0x114   :  { %1621 = vset.pattern.permute.xlu1 %v1717_v9  ;;  %v2093_v18 = vpop.permute.xlu1 %426  ;;  %v2095_v36 = vpop.permute.xlu0 %450 }
 0x115   :  { %2965 = vst [vmem:[#allocation39_spill] sm:$0xff] %v2095_v36  ;;  %808 = vperm.xlu1 %1621, %v1763_v1  }
 0x116   :  { %876 = vperm.xlu0 %1623, %v1794_v7  }
 0x118   :  { %v2099_v11 = vpop.permute.xlu1 %434  ;;  %v2101_v51 = vpop.permute.xlu0 %458 }
 0x119   :  { %2966 = vst [vmem:[#allocation40_spill] sm:$0xff] %v2101_v51  ;;  %816 = vperm.xlu1 %1621, %v1758_v0  }
 0x11a   :  { %1626 = vset.pattern.permute.xlu0 %v1719_v13 }
 0x11b   :  { %900 = vperm.xlu0 %1626, %v1775_v4  }
 0x11c   :  { %v2105_v10 = vpop.permute.xlu1 %438  ;;  %v2107_v9 = vpop.permute.xlu0 %466 }
 0x11d   :  { %2967 = vst [vmem:[#allocation41_spill] sm:$0xff] %v2107_v9  ;;  %820 = vperm.xlu1 %1621, %v1770_v3  }
 0x11f   :  { %912 = vperm.xlu0 %1626, %v1787_v6  }
 0x120   :  { %v2111_v36 = vpop.permute.xlu1 %446  ;;  %v2113_v19 = vpop.permute.xlu0 %474 }
 0x121   :  { %2968 = vst [vmem:[#allocation42_spill] sm:$0xff] %v2111_v36  ;;  %2969 = vst [vmem:[#allocation43_spill] sm:$0xff] %v2113_v19  ;;  %828 = vperm.xlu1 %1621, %v1782_v5  }
 0x123   :  { %920 = vperm.xlu0 %1626, %v1799_v8  }
 0x124   :  { %v2117_v51 = vpop.permute.xlu1 %454  ;;  %v2119_v17 = vpop.permute.xlu0 %482 }
 0x125   :  { %2970 = vst [vmem:[#allocation44_spill] sm:$0xff] %v2117_v51  ;;  %2971 = vst [vmem:[#allocation45_spill] sm:$0xff] %v2119_v17  ;;  %836 = vperm.xlu1 %1621, %v1794_v7  }
 0x127   :  { %1627 = vset.pattern.permute.xlu0 %v1720_v23 }
 0x128   :  { %v2122_v9 = vpop.permute.xlu1 %462  ;;  %944 = vperm.xlu0 %1627, %v1763_v1  }
 0x129   :  { %2972 = vst [vmem:[#allocation46_spill] sm:$0xff] %v2122_v9  ;;  %1624 = vset.pattern.permute.xlu1 %v1718_v15  ;;  %v2125_v36 = vpop.permute.xlu0 %526 }
 0x12a   :  { %852 = vperm.xlu1 %1624, %v1775_v4  }
 0x12c   :  { %v2128_v19 = vpop.permute.xlu1 %470  ;;  %956 = vperm.xlu0 %1627, %v1770_v3  }
 0x12d   :  { %2973 = vst [vmem:[#allocation47_spill] sm:$0xff] %v2128_v19  ;;  %v2131_v51 = vpop.permute.xlu0 %538  ;;  %v1721_v19 = vmov 10  }
 0x12e   :  { %2974 = vst [vmem:[#allocation48_spill] sm:$0xff] %v2131_v51  ;;  %856 = vperm.xlu1 %1624, %v1758_v0   ;;  %v125_v51 = vlaneseq }
 0x130   :  { %v2134_v17 = vpop.permute.xlu1 %478  ;;  %964 = vperm.xlu0 %1627, %v1782_v5  }
 0x131   :  { %2975 = vst [vmem:[#allocation49_spill] sm:$0xff] %v2134_v17  ;;  %v2137_v9 = vpop.permute.xlu0 %546 }
 0x132   :  { %2976 = vst [vmem:[#allocation50_spill] sm:$0xff] %v2137_v9  ;;  %864 = vperm.xlu1 %1624, %v1787_v6  }
 0x134   :  { %v2140_v15 = vpop.permute.xlu1 %486  ;;  %972 = vperm.xlu0 %1627, %v1794_v7  }
 0x135   :  { %2977 = vst [vmem:[#allocation51_spill] sm:$0xff] %v2140_v15  ;;  %v2143_v53 = vpop.permute.xlu0 %554 }
 0x136   :  { %2978 = vst [vmem:[#allocation52_spill] sm:$0xff] %v2143_v53  ;;  %872 = vperm.xlu1 %1624, %v1799_v8  }
 0x138   :  { %1630 = vset.pattern.permute.xlu0 %v1721_v19 }
 0x139   :  { %v2146_v55 = vpop.permute.xlu1 %530  ;;  %996 = vperm.xlu0 %1630, %v1775_v4   ;;  %v2149_v17 = vpop.permute.xlu0 %562 }
 0x13a   :  { %2979 = vst [vmem:[#allocation53_spill] sm:$0xff] %v2149_v17  ;;  %1625 = vset.pattern.permute.xlu1 %v1719_v13  ;;  %v2923_v13 = vmov 12  }
 0x13b   :  { %896 = vperm.xlu1 %1625, %v1763_v1  }
 0x13d   :  { %v2152_v9 = vpop.permute.xlu1 %534  ;;  %1008 = vperm.xlu0 %1630, %v1787_v6   ;;  %v2155_v15 = vpop.permute.xlu0 %570 }
 0x13e   :  { %2980 = vst [vmem:[#allocation54_spill] sm:$0xff] %v2155_v15 }
 0x13f   :  { %904 = vperm.xlu1 %1625, %v1758_v0  }
 0x141   :  { %v2158_v53 = vpop.permute.xlu1 %542  ;;  %1016 = vperm.xlu0 %1630, %v1799_v8   ;;  %v2161_v50 = vpop.permute.xlu0 %578 }
 0x142   :  { %2981 = vst [vmem:[#allocation55_spill] sm:$0xff] %v2158_v53  ;;  %2982 = vst [vmem:[#allocation56_spill] sm:$0xff] %v2161_v50 }
 0x143   :  { %908 = vperm.xlu1 %1625, %v1770_v3  }
 0x145   :  { %v2164_v17 = vpop.permute.xlu1 %550  ;;  %1631 = vset.pattern.permute.xlu0 %v2923_v13  ;;  %v2167_v49 = vpop.permute.xlu0 %586 }
 0x146   :  { %2983 = vst [vmem:[#allocation57_spill] sm:$0xff] %v2164_v17  ;;  %2984 = vst [vmem:[#allocation58_spill] sm:$0xff] %v2167_v49  ;;  %1040 = vperm.xlu0 %1631, %v1763_v1  }
 0x147   :  { %916 = vperm.xlu1 %1625, %v1782_v5  }
 0x149   :  { %v2171_v15 = vpop.permute.xlu1 %558 }
 0x14a   :  { %2985 = vst [vmem:[#allocation59_spill] sm:$0xff] %v2171_v15  ;;  %1052 = vperm.xlu0 %1631, %v1770_v3   ;;  %v2174_v53 = vpop.permute.xlu0 %646 }
 0x14b   :  { %2986 = vst [vmem:[#allocation60_spill] sm:$0xff] %v2174_v53  ;;  %924 = vperm.xlu1 %1625, %v1794_v7   ;;  %v2924_v53 = vmov 16  }
 0x14d   :  { %v2177_v50 = vpop.permute.xlu1 %566 }
 0x14e   :  { %2987 = vst [vmem:[#allocation61_spill] sm:$0xff] %v2177_v50  ;;  %1060 = vperm.xlu0 %1631, %v1782_v5   ;;  %v2180_v17 = vpop.permute.xlu0 %658 }
 0x14f   :  { %2988 = vst [vmem:[#allocation62_spill] sm:$0xff] %v2180_v17  ;;  %1628 = vset.pattern.permute.xlu1 %v1720_v23  ;;  %v126_v17 = vshrl.u32 %v125_v51, 7 }
 0x150   :  { %948 = vperm.xlu1 %1628, %v1775_v4  }
 0x151   :  { %v2183_v13 = vpop.permute.xlu1 %574  ;;  %v391_v51 = vsub.s32 2, %v126_v17  ;;  %v591_v2 = vsub.s32 4, %v126_v17 }
 0x152   :  { %2989 = vst [vmem:[#allocation63_spill] sm:$0xff] %v2183_v13  ;;  %1068 = vperm.xlu0 %1631, %v1794_v7   ;;  %v2186_v49 = vpop.permute.xlu0 %666 }
 0x153   :  { %2990 = vst [vmem:[#allocation64_spill] sm:$0xff] %v2186_v49 }
 0x154   :  { %952 = vperm.xlu1 %1628, %v1758_v0  }
 0x155   :  { %v2189_v15 = vpop.permute.xlu1 %582 }
 0x156   :  { %2991 = vst [vmem:[#allocation65_spill] sm:$0xff] %v2189_v15  ;;  %1634 = vset.pattern.permute.xlu0 %v2924_v53  ;;  %v2192_v50 = vpop.permute.xlu0 %674  ;;  %v127_v53 = vsub.s32 0, %v126_v17 }
 0x157   :  { %2992 = vst [vmem:[#allocation66_spill] sm:$0xff] %v2192_v50  ;;  %1092 = vperm.xlu0 %1634, %v1775_v4   ;;  %v28_v50 = vld [vmem:[%s2919_s0] sm:$0xff]  ;;  %v491_v4 = vsub.s32 3, %v126_v17 }
 0x158   :  { %960 = vperm.xlu1 %1628, %v1787_v6  }
 0x15a   :  { %v2196_v23 = vpop.permute.xlu1 %642  ;;  %v2198_v13 = vpop.permute.xlu0 %682 }
 0x15b   :  { %2993 = vst [vmem:[#allocation67_spill] sm:$0xff] %v2196_v23  ;;  %2994 = vst [vmem:[#allocation68_spill] sm:$0xff] %v2198_v13  ;;  %1104 = vperm.xlu0 %1634, %v1787_v6   ;;  %v291_v13 = vsub.s32 1, %v126_v17  ;;  %v2213_v6 = vrot.slane %v28_v50, %v127_v53 }
 0x15c   :  { %968 = vperm.xlu1 %1628, %v1799_v8  }
 0x15d   :  { %v131_v53 = vmul.f32 %v2213_v6, %v1895_v20  ;;  %v134_v17 = vmul.f32 %v2213_v6, %v1907_v25  ;;  %v136_v20 = vmul.f32 %v2213_v6, %v1913_v27  ;;  %v139_v25 = vmul.f32 %v2213_v6, %v1927_v32 }
 0x15e   :  { %v2202_v15 = vpop.permute.xlu1 %650  ;;  %v2204_v49 = vpop.permute.xlu0 %690  ;;  %v2264_v27 = vmul.f32 %v2213_v6, %v1933_v34 }
 0x15f   :  { %2995 = vst [vmem:[#allocation69_spill] sm:$0xff] %v2202_v15  ;;  %2996 = vst [vmem:[#allocation70_spill] sm:$0xff] %v2204_v49  ;;  %1112 = vperm.xlu0 %1634, %v1799_v8   ;;  %v2931_v49 = vmov 13   ;;  %v2220_v8 = vrot.slane %v28_v50, %v291_v13  ;;  %v132_v13 = vmul.f32 %v2213_v6, %v1901_v22  ;;  %v137_v22 = vmul.f32 %v2213_v6, %v1921_v30 }
 0x160   :  { %1629 = vset.pattern.permute.xlu1 %v1721_v19  ;;  %v2222_v19 = vrot.slane %v28_v50, %v391_v51  ;;  %v133_v51 = vmul.f32 %v2213_v6, %v1910_v26  ;;  %v2260_v26 = vmul.f32 %v2213_v6, %v1931_v33  ;;  %v2272_v30 = vmul.f32 %v2213_v6, %v1937_v35 }
 0x161   :  { %992 = vperm.xlu1 %1629, %v1763_v1   ;;  %v293_v33 = vmul.f32 %v2220_v8, %v1992_v54  ;;  %v211_v34 = vadd.f32 %v1949_v40, %v131_v53  ;;  %v295_v35 = vmul.f32 %v2220_v8, %v1998_v57  ;;  %v296_v54 = vmul.f32 %v2220_v8, %v2004_v59 }
 0x162   :  { %v2211_v23 = vpop.permute.xlu1 %654  ;;  %v2215_v15 = vpop.permute.xlu0 %698  ;;  %v216_v40 = vadd.f32 %v1964_v45, %v136_v20  ;;  %v393_v57 = vmul.f32 %v2222_v19, %v2036_v38  ;;  %v394_v59 = vmul.f32 %v2222_v19, %v2046_v16  ;;  %v299_v53 = vmul.f32 %v2220_v8, %v2006_v60 }
 0x163   :  { %2997 = vst [vmem:[#allocation71_spill] sm:$0xff] %v2211_v23  ;;  %2998 = vst [vmem:[#allocation72_spill] sm:$0xff] %v2215_v15  ;;  %1635 = vset.pattern.permute.xlu0 %v2931_v49  ;;  %v129_v15 = vmul.f32 %v2213_v6, %v1899_v21  ;;  %v130_v49 = vmul.f32 %v2213_v6, %v1904_v24  ;;  %v2232_v23 = vrot.slane %v28_v50, %v491_v4 }
 0x164   :  { %1136 = vperm.xlu0 %1635, %v1763_v1   ;;  %v135_v4 = vmul.f32 %v2213_v6, %v1915_v28  ;;  %v138_v21 = vmul.f32 %v2213_v6, %v1919_v29  ;;  %v2253_v24 = vmul.f32 %v2213_v6, %v1925_v31  ;;  %v2266_v28 = vrot.slane %v28_v50, %v591_v2 }
 0x165   :  { %1000 = vperm.xlu1 %1629, %v1758_v0   ;;  %v210_v31 = vadd.f32 %v1943_v37, %v130_v49  ;;  %v209_v32 = vadd.f32 %v1946_v39, %v129_v15  ;;  %v212_v50 = vadd.f32 %v1952_v41, %v132_v13  ;;  %v294_v2 = vmul.f32 %v2220_v8, %v1994_v56 }
 0x166   :  { %v2224_v63 = vpop.permute.xlu1 %662  ;;  %v213_v37 = vadd.f32 %v1955_v42, %v133_v51  ;;  %v214_v39 = vadd.f32 %v1958_v43, %v134_v17  ;;  %v215_v49 = vadd.f32 %v1961_v44, %v135_v4  ;;  %v217_v41 = vadd.f32 %v1967_v46, %v137_v22  ;;  %v3001_v22 = vld [vmem:[#allocation19_spill] sm:$0xff] }
 0x167   :  { %v2234_v1 = vpop.permute.xlu0 %768  ;;  %v2296_v56 = vadd.f32 %v1969_v47, %v138_v21  ;;  %v219_v43 = vadd.f32 %v1973_v48, %v139_v25  ;;  %v309_v44 = vadd.f32 %v293_v33, %v209_v32  ;;  %v310_v46 = vadd.f32 %v294_v2, %v210_v31  ;;  %v3003_v33 = vld [vmem:[#allocation9_spill] sm:$0xff] }
 0x168   :  { %2999 = vst [vmem:[#allocation73_spill] sm:$0xff] %v2234_v1  ;;  %1148 = vperm.xlu0 %1635, %v1770_v3   ;;  %v311_v15 = vadd.f32 %v295_v35, %v211_v34  ;;  %v297_v47 = vmul.f32 %v2220_v8, %v2000_v58  ;;  %v493_v38 = vmul.f32 %v2232_v23, %v2093_v18  ;;  %v1725_v21 = vmov 17   ;;  %v3005_v35 = vld [vmem:[#allocation13_spill] sm:$0xff] }
 0x169   :  { %1004 = vperm.xlu1 %1629, %v1770_v3   ;;  %v312_v48 = vadd.f32 %v296_v54, %v212_v50  ;;  %v396_v16 = vmul.f32 %v2222_v19, %v2042_v14  ;;  %v494_v13 = vmul.f32 %v2232_v23, %v2084_v12  ;;  %v495_v58 = vmul.f32 %v2232_v23, %v2099_v11  ;;  %v3004_v50 = vld [vmem:[#allocation48_spill] sm:$0xff] }
 0x16a   :  { %v2268_v29 = vpop.permute.xlu1 %670  ;;  %v593_v18 = vmul.f32 %v2266_v28, %v2125_v36  ;;  %v298_v60 = vmul.f32 %v2220_v8, %v2010_v61  ;;  %v301_v14 = vmul.f32 %v2220_v8, %v2012_v62  ;;  %v410_v51 = vadd.f32 %v394_v59, %v310_v46  ;;  %v3000_v61 = vld [vmem:[#allocation18_spill] sm:$0xff] }
 0x16b   :  { %v2278_v1 = vpop.permute.xlu0 %780  ;;  %v496_v12 = vmul.f32 %v2232_v23, %v2105_v10  ;;  %v594_v11 = vmul.f32 %v2266_v28, %v2146_v55  ;;  %v595_v36 = vmul.f32 %v2266_v28, %v2152_v9  ;;  %v300_v62 = vmul.f32 %v2220_v8, %v3000_v61  ;;  %v3014_v61 = vld [vmem:[#allocation55_spill] sm:$0xff] }
 0x16c   :  { %1156 = vperm.xlu0 %1635, %v1782_v5   ;;  %v303_v25 = vmul.f32 %v2220_v8, %v3001_v22  ;;  %v412_v31 = vadd.f32 %v396_v16, %v312_v48  ;;  %v3002_v32 = vmov 12   ;;  %v510_v10 = vadd.f32 %v494_v13, %v410_v51 }
 0x16d   :  { %1012 = vperm.xlu1 %1629, %v1782_v5   ;;  %v395_v5 = vmul.f32 %v2222_v19, %v2052_v52  ;;  %v409_v52 = vadd.f32 %v393_v57, %v309_v44  ;;  %v596_v9 = vmul.f32 %v2266_v28, %v3004_v50  ;;  %v220_v54 = vadd.f32 %v3005_v35, %v2253_v24  ;;  %v3006_v57 = vld [vmem:[#allocation14_spill] sm:$0xff] }
 0x16e   :  { %v2300_v42 = vpop.permute.xlu1 %678  ;;  %v2355_v44 = vadd.f32 %v3006_v57, %v2264_v27  ;;  %v313_v59 = vadd.f32 %v297_v47, %v213_v37  ;;  %v610_v48 = vadd.f32 %v594_v11, %v510_v10  ;;  %v314_v13 = vadd.f32 %v298_v60, %v214_v39  ;;  %v3009_v24 = vld [vmem:[#allocation38_spill] sm:$0xff]  ;;  %v3020_v57 = vld [vmem:[#allocation69_spill] sm:$0xff] }
 0x16f   :  { %v2307_v45 = vpop.permute.xlu0 %788  ;;  %v509_v4 = vadd.f32 %v493_v38, %v409_v52  ;;  %v512_v38 = vadd.f32 %v496_v12, %v412_v31  ;;  %v3010_v27 = vld [vmem:[#allocation10_spill] sm:$0xff]  ;;  %v316_v37 = vadd.f32 %v300_v62, %v216_v40  ;;  %v2366_v47 = vadd.f32 %v303_v25, %v219_v43  ;;  %v3011_v12 = vld [vmem:[#allocation20_spill] sm:$0xff]  ;;  %v3015_v62 = vld [vmem:[#allocation67_spill] sm:$0xff] }
 0x170   :  { %1164 = vperm.xlu0 %1635, %v1794_v7   ;;  %v302_v39 = vmul.f32 %v2220_v8, %v3011_v12  ;;  %v3013_v11 = vld [vmem:[#allocation42_spill] sm:$0xff]  ;;  %v597_v40 = vmul.f32 %v2266_v28, %v3014_v61  ;;  %v626_v43 = vmax.f32 %v610_v48, 0.0 }
 0x171   :  { %1020 = vperm.xlu1 %1629, %v1794_v7   ;;  %v411_v7 = vadd.f32 %v395_v5, %v311_v15  ;;  %v609_v55 = vadd.f32 %v593_v18, %v509_v4  ;;  %v3007_v5 = vld [vmem:[#allocation28_spill] sm:$0xff]  ;;  %v315_v15 = vadd.f32 %v299_v53, %v215_v49  ;;  %v3008_v18 = vld [vmem:[#allocation26_spill] sm:$0xff]  ;;  %v612_v4 = vadd.f32 %v596_v9, %v512_v38  ;;  %v3021_v38 = vld [vmem:[#allocation21_spill] sm:$0xff] }
 0x172   :  { %v2325_v17 = vpop.permute.xlu1 %686  ;;  %v397_v46 = vmul.f32 %v2222_v19, %v3007_v5  ;;  %v398_v51 = vmul.f32 %v2222_v19, %v3008_v18  ;;  %v3019_v9 = vld [vmem:[#allocation60_spill] sm:$0xff]  ;;  %v305_v48 = vmul.f32 %v2220_v8, %v3021_v38  ;;  %v3023_v18 = vld [vmem:[#allocation30_spill] sm:$0xff] }
 0x173   :  { %v2331_v20 = vpop.permute.xlu0 %796  ;;  %v511_v34 = vadd.f32 %v495_v58, %v411_v7  ;;  %v317_v58 = vadd.f32 %v301_v14, %v217_v41  ;;  %v497_v7 = vmul.f32 %v2232_v23, %v3009_v24  ;;  %v625_v49 = vmax.f32 %v609_v55, 0.0  ;;  %v3012_v41 = vld [vmem:[#allocation22_spill] sm:$0xff] }
 0x174   :  { %1638 = vset.pattern.permute.xlu0 %v1725_v21  ;;  %v304_v60 = vmul.f32 %v2220_v8, %v3012_v41  ;;  %v413_v14 = vadd.f32 %v397_v46, %v313_v59  ;;  %v414_v31 = vadd.f32 %v398_v51, %v314_v13  ;;  %v3018_v55 = vld [vmem:[#allocation50_spill] sm:$0xff]  ;;  %v706_v35 = vmul.f32 %v3019_v9, %v626_v43  ;;  %v3024_v41 = vld [vmem:[#allocation71_spill] sm:$0xff]  ;;  %v3031_v9 = vld [vmem:[#allocation44_spill] sm:$0xff] }
 0x175   :  { %1632 = vset.pattern.permute.xlu1 %v3002_v32  ;;  %1188 = vperm.xlu0 %1638, %v3003_v33   ;;  %v611_v16 = vadd.f32 %v595_v36, %v511_v34  ;;  %v498_v36 = vmul.f32 %v2232_v23, %v3013_v11  ;;  %v705_v22 = vmul.f32 %v3015_v62, %v625_v49  ;;  %v3016_v32 = vld [vmem:[#allocation27_spill] sm:$0xff]  ;;  %v628_v5 = vmax.f32 %v612_v4, 0.0  ;;  %v3026_v61 = vld [vmem:[#allocation46_spill] sm:$0xff] }
 0x176   :  { %1044 = vperm.xlu1 %1632, %v3003_v33   ;;  %v2349_v2 = vpop.permute.xlu1 %694  ;;  %v400_v33 = vmul.f32 %v2222_v19, %v3016_v32  ;;  %v513_v10 = vadd.f32 %v497_v7, %v413_v14  ;;  %v3017_v34 = vld [vmem:[#allocation11_spill] sm:$0xff]  ;;  %v598_v50 = vmul.f32 %v2266_v28, %v3018_v55  ;;  %v318_v46 = vadd.f32 %v302_v39, %v2296_v56  ;;  %v3025_v39 = vld [vmem:[#allocation32_spill] sm:$0xff]  ;;  %v3033_v38 = vld [vmem:[#allocation34_spill] sm:$0xff] }
 0x177   :  { %v627_v25 = vmax.f32 %v611_v16, 0.0  ;;  %v3022_v16 = vld [vmem:[#allocation29_spill] sm:$0xff]  ;;  %v399_v51 = vmul.f32 %v2222_v19, %v3023_v18  ;;  %v514_v7 = vadd.f32 %v498_v36, %v414_v31  ;;  %v721_v12 = vadd.f32 %v706_v35, %v705_v22  ;;  %v3028_v31 = vld [vmem:[#allocation8_spill] sm:$0xff] }
 0x178   :  { %v2359_v52 = vpop.permute.xlu0 %812  ;;  %v402_v13 = vmul.f32 %v2222_v19, %v3022_v16  ;;  %v613_v49 = vadd.f32 %v597_v40, %v513_v10  ;;  %v708_v4 = vmul.f32 %v3024_v41, %v628_v5  ;;  %v416_v56 = vadd.f32 %v400_v33, %v316_v37  ;;  %v3030_v33 = vld [vmem:[#allocation53_spill] sm:$0xff]  ;;  %v3034_v16 = vld [vmem:[#allocation59_spill] sm:$0xff]  ;;  %v3036_v41 = vld [vmem:[#allocation62_spill] sm:$0xff] }
 0x179   :  { %1200 = vperm.xlu0 %1638, %v3010_v27   ;;  %v707_v59 = vmul.f32 %v3020_v57, %v627_v25  ;;  %v401_v11 = vmul.f32 %v2222_v19, %v3025_v39  ;;  %v502_v43 = vmul.f32 %v2232_v23, %v3026_v61  ;;  %v1726_v62 = vmov 14   ;;  %v3027_v25 = vld [vmem:[#allocation39_spill] sm:$0xff]  ;;  %v3032_v57 = vld [vmem:[#allocation57_spill] sm:$0xff] }
 0x17a   :  { %1048 = vperm.xlu1 %1632, %v1758_v0   ;;  %v2369_v53 = vpop.permute.xlu1 %702  ;;  %v499_v36 = vmul.f32 %v2232_v23, %v3027_v25  ;;  %v614_v40 = vadd.f32 %v598_v50, %v514_v7  ;;  %v415_v37 = vadd.f32 %v399_v51, %v315_v15  ;;  %v602_v10 = vmul.f32 %v2266_v28, %v3030_v33  ;;  %v3035_v7 = vld [vmem:[#allocation52_spill] sm:$0xff] }
 0x17b   :  { %v722_v22 = vadd.f32 %v721_v12, %v707_v59  ;;  %v500_v35 = vmul.f32 %v2232_v23, %v3031_v9  ;;  %v599_v50 = vmul.f32 %v2266_v28, %v3032_v57  ;;  %v629_v59 = vmax.f32 %v613_v49, 0.0 }
 0x17c   :  { %v2380_v0 = vpop.permute.xlu0 %824  ;;  %v417_v5 = vadd.f32 %v401_v11, %v317_v58  ;;  %v403_v15 = vmul.f32 %v2222_v19, %v3033_v38  ;;  %v515_v51 = vadd.f32 %v499_v36, %v415_v37  ;;  %v600_v12 = vmul.f32 %v2266_v28, %v3035_v7  ;;  %v3038_v58 = vld [vmem:[#allocation31_spill] sm:$0xff]  ;;  %v3039_v11 = vld [vmem:[#allocation41_spill] sm:$0xff] }
 0x17d   :  { %1208 = vperm.xlu0 %1638, %v3017_v34   ;;  %v709_v39 = vmul.f32 %v3036_v41, %v629_v59  ;;  %v630_v61 = vmax.f32 %v614_v40, 0.0  ;;  %v3037_v25 = vmov 16   ;;  %v404_v49 = vmul.f32 %v2222_v19, %v3038_v58 }
 0x17e   :  { %1056 = vperm.xlu1 %1632, %v3010_v27   ;;  %v320_v27 = vadd.f32 %v304_v60, %v220_v54  ;;  %v418_v54 = vadd.f32 %v402_v13, %v318_v46  ;;  %v3029_v60 = vld [vmem:[#allocation40_spill] sm:$0xff]  ;;  %v601_v13 = vmul.f32 %v2266_v28, %v3034_v16  ;;  %v615_v37 = vadd.f32 %v599_v50, %v515_v51 }
 0x17f   :  { %v2397_v24 = vpop.permute.xlu1 %772  ;;  %v501_v32 = vmul.f32 %v2232_v23, %v3029_v60  ;;  %v710_v40 = vmul.f32 %v2224_v63, %v630_v61  ;;  %v419_v33 = vadd.f32 %v403_v15, %v2366_v47  ;;  %v321_v63 = vadd.f32 %v305_v48, %v2355_v44  ;;  %v2455_v47 = vld [vmem:[%s2920_s1 + $0x28] sm:$0xff]  ;;  %v3044_v15 = vld [vmem:[#allocation54_spill] sm:$0xff] }
 0x180   :  { %v2400_v14 = vpop.permute.xlu0 %832  ;;  %v518_v46 = vadd.f32 %v502_v43, %v418_v54  ;;  %v503_v43 = vmul.f32 %v2232_v23, %v3039_v11  ;;  %v516_v54 = vadd.f32 %v500_v35, %v416_v56  ;;  %v3043_v56 = vld [vmem:[#allocation15_spill] sm:$0xff]  ;;  %v3045_v48 = vld [vmem:[#allocation24_spill] sm:$0xff]  ;;  %v631_v7 = vmax.f32 %v615_v37, 0.0  ;;  %v3048_v11 = vld [vmem:[#allocation33_spill] sm:$0xff] }
 0x181   :  { %1639 = vset.pattern.permute.xlu0 %v1726_v62  ;;  %v222_v35 = vadd.f32 %v3043_v56, %v2260_v26  ;;  %v2463_v26 = vld [vmem:[%s2920_s1 + $0x10] sm:$0xff]  ;;  %v3046_v51 = vld [vmem:[#allocation36_spill] sm:$0xff]  ;;  %v2483_v37 = vld [vmem:[%s2920_s1 + $0x38] sm:$0xff] }
 0x182   :  { %1064 = vperm.xlu1 %1632, %v3017_v34   ;;  %1232 = vperm.xlu0 %1639, %v3028_v31   ;;  %v723_v34 = vadd.f32 %v722_v22, %v708_v4  ;;  %v517_v4 = vadd.f32 %v501_v32, %v417_v5  ;;  %v618_v22 = vadd.f32 %v602_v10, %v518_v46  ;;  %v3041_v32 = vld [vmem:[#allocation61_spill] sm:$0xff]  ;;  %v3042_v10 = vld [vmem:[#allocation12_spill] sm:$0xff] }
 0x183   :  { %v2415_v55 = vpop.permute.xlu1 %776  ;;  %v603_v59 = vmul.f32 %v2266_v28, %v3041_v32  ;;  %v616_v50 = vadd.f32 %v600_v12, %v516_v54  ;;  %v519_v38 = vadd.f32 %v503_v43, %v419_v33  ;;  %v604_v46 = vmul.f32 %v2266_v28, %v3044_v15  ;;  %v3053_v15 = vld [vmem:[#allocation63_spill] sm:$0xff] }
 0x184   :  { %v724_v60 = vadd.f32 %v723_v34, %v709_v39  ;;  %v617_v57 = vadd.f32 %v601_v13, %v517_v4  ;;  %v420_v34 = vadd.f32 %v404_v49, %v320_v27  ;;  %v634_v16 = vmax.f32 %v618_v22, 0.0  ;;  %v3047_v49 = vld [vmem:[#allocation23_spill] sm:$0xff]  ;;  %v3049_v22 = vld [vmem:[#allocation64_spill] sm:$0xff] }
 0x185   :  { %v2425_v18 = vpop.permute.xlu0 %848  ;;  %v306_v13 = vmul.f32 %v2220_v8, %v3045_v48  ;;  %v405_v27 = vmul.f32 %v2222_v19, %v3046_v51  ;;  %v619_v39 = vadd.f32 %v603_v59, %v519_v38  ;;  %v307_v4 = vmul.f32 %v2220_v8, %v3047_v49  ;;  %v3057_v49 = vld [vmem:[#allocation56_spill] sm:$0xff] }
 0x186   :  { %1633 = vset.pattern.permute.xlu1 %v3037_v25  ;;  %1244 = vperm.xlu0 %1639, %v1770_v3   ;;  %v3040_v3 = vld [vmem:[#allocation47_spill] sm:$0xff]  ;;  %v725_v12 = vadd.f32 %v724_v60, %v710_v40  ;;  %v633_v61 = vmax.f32 %v617_v57, 0.0  ;;  %v714_v25 = vmul.f32 %v2300_v42, %v634_v16  ;;  %v406_v43 = vmul.f32 %v2222_v19, %v3048_v11 }
 0x187   :  { %1088 = vperm.xlu1 %1633, %v3028_v31   ;;  %v2437_v36 = vpop.permute.xlu1 %784  ;;  %v504_v9 = vmul.f32 %v2232_v23, %v3040_v3  ;;  %v143_v31 = vmul.f32 %v2213_v6, %v3042_v10  ;;  %v711_v54 = vmul.f32 %v3049_v22, %v631_v7  ;;  %v632_v33 = vmax.f32 %v616_v50, 0.0  ;;  %v3050_v40 = vld [vmem:[#allocation43_spill] sm:$0xff]  ;;  %v3051_v3 = vld [vmem:[#allocation66_spill] sm:$0xff]  ;;  %v3054_v7 = vld [vmem:[#allocation16_spill] sm:$0xff] }
 0x188   :  { %v505_v42 = vmul.f32 %v2232_v23, %v3050_v40  ;;  %v2492_v57 = vld [vmem:[%s2920_s1 + $0x18] sm:$0xff]  ;;  %v322_v32 = vadd.f32 %v306_v13, %v222_v35  ;;  %v421_v59 = vadd.f32 %v405_v27, %v321_v63  ;;  %v635_v16 = vmax.f32 %v619_v39, 0.0  ;;  %v3056_v13 = vld [vmem:[#allocation37_spill] sm:$0xff]  ;;  %v3058_v22 = vld [vmem:[#allocation68_spill] sm:$0xff] }
 0x189   :  { %v2445_v5 = vpop.permute.xlu0 %860  ;;  %v520_v41 = vadd.f32 %v504_v9, %v420_v34  ;;  %v713_v9 = vmul.f32 %v3051_v3, %v633_v61  ;;  %v712_v10 = vmul.f32 %v2268_v29, %v632_v33  ;;  %v726_v56 = vadd.f32 %v725_v12, %v711_v54  ;;  %v3052_v34 = vld [vmem:[#allocation49_spill] sm:$0xff] }
 0x18a   :  { %1252 = vperm.xlu0 %1639, %v2455_v47   ;;  %v506_v38 = vmul.f32 %v2232_v23, %v3052_v34  ;;  %v3055_v61 = vld [vmem:[#allocation25_spill] sm:$0xff]  ;;  %v422_v63 = vadd.f32 %v406_v43, %v322_v32  ;;  %v407_v29 = vmul.f32 %v2222_v19, %v3056_v13  ;;  %v1727_v27 = vmov 19  }
 0x18b   :  { %1096 = vperm.xlu1 %1633, %v2463_v26   ;;  %v2466_v44 = vpop.permute.xlu1 %792  ;;  %v620_v60 = vadd.f32 %v604_v46, %v520_v41  ;;  %v605_v46 = vmul.f32 %v2266_v28, %v3053_v15  ;;  %v737_v48 = vadd.f32 %v714_v25, %v713_v9  ;;  %v223_v41 = vadd.f32 %v3054_v7, %v143_v31  ;;  %v2515_v31 = vld [vmem:[%s2920_s1] sm:$0xff]  ;;  %v3059_v43 = vld [vmem:[#allocation17_spill] sm:$0xff] }
 0x18c   :  { %v308_v35 = vmul.f32 %v2220_v8, %v3055_v61  ;;  %v521_v12 = vadd.f32 %v505_v42, %v421_v59  ;;  %v606_v11 = vmul.f32 %v2266_v28, %v3057_v49  ;;  %v715_v39 = vmul.f32 %v3058_v22, %v635_v16  ;;  %v3060_v59 = vld [vmem:[#allocation35_spill] sm:$0xff]  ;;  %v3061_v15 = vld [vmem:[#allocation45_spill] sm:$0xff]  ;;  %v3065_v22 = vld [vmem:[#allocation70_spill] sm:$0xff] }
 0x18d   :  { %v2473_v58 = vpop.permute.xlu0 %868  ;;  %v636_v25 = vmax.f32 %v620_v60, 0.0  ;;  %v224_v54 = vadd.f32 %v3059_v43, %v2272_v30  ;;  %v323_v33 = vadd.f32 %v307_v4, %v223_v41  ;;  %v727_v40 = vadd.f32 %v726_v56, %v712_v10  ;;  %v3062_v30 = vld [vmem:[#allocation51_spill] sm:$0xff]  ;;  %v3063_v10 = vld [vmem:[#allocation65_spill] sm:$0xff] }
 0x18e   :  { %1260 = vperm.xlu0 %1639, %v2483_v37   ;;  %v522_v3 = vadd.f32 %v506_v38, %v422_v63  ;;  %v621_v9 = vadd.f32 %v605_v46, %v521_v12  ;;  %v738_v32 = vadd.f32 %v737_v48, %v715_v39  ;;  %v408_v34 = vmul.f32 %v2222_v19, %v3060_v59  ;;  %v3064_v12 = vld [vmem:[#allocation58_spill] sm:$0xff] }
 0x18f   :  { %1100 = vperm.xlu1 %1633, %v2492_v57   ;;  %v716_v60 = vmul.f32 %v2325_v17, %v636_v25  ;;  %v507_v16 = vmul.f32 %v2232_v23, %v3061_v15  ;;  %v324_v61 = vadd.f32 %v308_v35, %v224_v54  ;;  %v423_v13 = vadd.f32 %v407_v29, %v323_v33 }
 0x190   :  { %v2496_v50 = vpop.permute.xlu1 %808  ;;  %v622_v49 = vadd.f32 %v606_v11, %v522_v3  ;;  %v508_v4 = vmul.f32 %v2232_v23, %v3062_v30  ;;  %v607_v17 = vmul.f32 %v2266_v28, %v3063_v10  ;;  %v728_v56 = vrot.slane %v727_v40, 4  ;;  %v2563_v30 = vld [vmem:[%s2920_s1 + $0x20] sm:$0xff] }
 0x191   :  { %v877_v51 = vpop.permute.xlu0 %876  ;;  %v637_v46 = vmax.f32 %v621_v9, 0.0  ;;  %v739_v48 = vadd.f32 %v738_v32, %v716_v60  ;;  %v804_v41 = vmul.f32 %v2307_v45, %v2213_v6  ;;  %v424_v35 = vadd.f32 %v408_v34, %v324_v61  ;;  %v2549_v60 = vld [vmem:[%s2920_s1 + $0x8] sm:$0xff] }
 0x192   :  { %1642 = vset.pattern.permute.xlu0 %v1727_v27  ;;  %v523_v63 = vadd.f32 %v507_v16, %v423_v13  ;;  %v608_v11 = vmul.f32 %v2266_v28, %v3064_v12  ;;  %v638_v25 = vmax.f32 %v622_v49, 0.0  ;;  %v884_v43 = vmul.f32 %v2473_v58, %v2220_v8 }
 0x193   :  { %1108 = vperm.xlu1 %1633, %v2455_v47   ;;  %1337 = vperm.xlu0 %1642, %v2515_v31   ;;  %v717_v39 = vmul.f32 %v3065_v22, %v637_v46  ;;  %v3066_v54 = vmov 13   ;;  %v1728_v33 = vmov 18   ;;  %v524_v3 = vadd.f32 %v508_v4, %v424_v35  ;;  %v2575_v35 = vld [vmem:[%s2920_s1 + $0x30] sm:$0xff]  ;;  %s1579_s1 = sld [smem:[#allocation2 + $0x1]] }
 0x194   :  { %v2520_v42 = vpop.permute.xlu1 %816  ;;  %v623_v45 = vadd.f32 %v607_v17, %v523_v63  ;;  %v729_v9 = vadd.f32 %v728_v56, %v727_v40  ;;  %v718_v58 = vmul.f32 %v2349_v2, %v638_v25  ;;  %v806_v34 = vmul.f32 %v2331_v20, %v2213_v6 }
 0x195   :  { %v740_v59 = vadd.f32 %v739_v48, %v717_v39  ;;  %v624_v61 = vadd.f32 %v608_v11, %v524_v3  ;;  %v886_v40 = vmul.f32 %v877_v51, %v2220_v8  ;;  %v800_v17 = vmul.f32 %v2397_v24, %v2213_v6  ;;  %v3067_v51 = vld [vmem:[#allocation72_spill] sm:$0xff] }
 0x196   :  { %v901_v7 = vpop.permute.xlu0 %900  ;;  %v639_v2 = vmax.f32 %v623_v45, 0.0  ;;  %v730_v4 = vrot.slane %v729_v9, 2 }
 0x197   :  { %1116 = vperm.xlu1 %1633, %v2483_v37   ;;  %1349 = vperm.xlu0 %1642, %v2492_v57   ;;  %v741_v20 = vadd.f32 %v740_v59, %v718_v58  ;;  %v640_v46 = vmax.f32 %v624_v61, 0.0  ;;  %v840_v22 = vadd.f32 %v2359_v52, %v800_v17  ;;  %v928_v39 = vmul.f32 %v901_v7, %v2222_v19 }
 0x198   :  { %v2533_v38 = vpop.permute.xlu1 %820  ;;  %v719_v56 = vmul.f32 %v3067_v51, %v639_v2  ;;  %v731_v63 = vadd.f32 %v730_v4, %v729_v9  ;;  %v1729_v7 = vmov 15   ;;  %v735_v58 = vstv %s2578_s10 }
 0x199   :  { %v720_v24 = vmul.f32 %v2369_v53, %v640_v46  ;;  %v803_v53 = vmul.f32 %v2437_v36, %v2213_v6  ;;  %v805_v36 = vmul.f32 %v2466_v44, %v2213_v6  ;;  %v879_v46 = vmul.f32 %v2425_v18, %v2220_v8 }
 0x19a   :  { %v2537_v29 = vpop.permute.xlu0 %912  ;;  %v742_v12 = vadd.f32 %v741_v20, %v719_v56  ;;  %v732_v3 = vrot.slane %v731_v63, 1 }
 0x19b   :  { %1636 = vset.pattern.permute.xlu1 %v3066_v54  ;;  %1647 = vset.pattern.permute.xlu0 %v1728_v33  ;;  %v843_v61 = vadd.f32 %v2380_v0, %v803_v53  ;;  %v845_v51 = vadd.f32 %v2400_v14, %v805_v36 }
 0x19c   :  { %1140 = vperm.xlu1 %1636, %v2549_v60   ;;  %v829_v32 = vpop.permute.xlu1 %828  ;;  %1276 = vperm.xlu0 %1647, %v2549_v60   ;;  %v743_v45 = vadd.f32 %v742_v12, %v720_v24  ;;  %v733_v59 = vadd.f32 %v732_v3, %v731_v63 }
 0x19d   :  { %v844_v15 = vadd.f32 %v829_v32, %v804_v41 }
 0x19e   :  { %v921_v16 = vpop.permute.xlu0 %920  ;;  %v736_v20 = vadd.f32 %v735_v58, %v733_v59 }
 0x19f   :  { %v2557_v13 = vadd.f32 %v884_v43, %v844_v15  ;;  %v933_v44 = vmul.f32 %v921_v16, %v2222_v19  ;;  %v802_v16 = vmul.f32 %v2278_v1, %v2213_v6  ;;  %v882_v1 = vmul.f32 %v2445_v5, %v2220_v8 }
 0x1a0   :  { %1144 = vperm.xlu1 %1636, %v2463_v26   ;;  %v837_v49 = vpop.permute.xlu1 %836  ;;  %1288 = vperm.xlu0 %1647, %v2563_v30   ;;  %v753_v12 = vsub.f32 0.0, %v736_v20 }
 0x1a1   :  { %v846_v10 = vadd.f32 %v837_v49, %v806_v34  ;;  %v744_v34 = vrot.slane %v743_v45, 4  ;;  %v3068_v49 = vld [vmem:[#allocation73_spill] sm:$0xff] }
 0x1a2   :  { %v799_v2 = vmul.f32 %v3068_v49, %v2213_v6 }
 0x1a3   :  { %v2569_v48 = vadd.f32 %v886_v40, %v846_v10  ;;  %v945_v41 = vpop.permute.xlu0 %944  ;;  %v931_v40 = vmul.f32 %v2537_v29, %v2222_v19  ;;  %v745_v10 = vadd.f32 %v744_v34, %v743_v45  ;;  %v1730_v45 = vmov 21  }
 0x1a4   :  { %1152 = vperm.xlu1 %1636, %v2563_v30   ;;  %1296 = vperm.xlu0 %1647, %v2575_v35   ;;  %v839_v63 = vadd.f32 %v2496_v50, %v799_v2  ;;  %v754_v50 = vmul.f32 1.442695, %v753_v12  ;;  %v751_v2 = vstv %s1579_s1 }
 0x1a5   :  { %v853_v11 = vpop.permute.xlu1 %852 }
 0x1a6   :  { %v880_v25 = vmul.f32 %v853_v11, %v2220_v8  ;;  %v746_v11 = vrot.slane %v745_v10, 2  ;;  %1656 = vpow2.f32 %v754_v50 }
 0x1a7   :  { %v2584_v43 = vpop.permute.xlu0 %956 }
 0x1a8   :  { %v888_v54 = vadd.f32 %v880_v25, %v840_v22  ;;  %1160 = vperm.xlu1 %1636, %v2575_v35   ;;  %1300 = vperm.xlu0 %1647, %v2483_v37   ;;  %v975_v25 = vmul.f32 %v945_v41, %v2232_v23  ;;  %v747_v53 = vadd.f32 %v746_v11, %v745_v10 }
 0x1a9   :  { %v2588_v9 = vpop.permute.xlu1 %856  ;;  %v842_v41 = vadd.f32 %v2533_v38, %v802_v16 }
 0x1aa   :  { %v2592_v52 = vadd.f32 %v928_v39, %v888_v54  ;;  %v887_v39 = vadd.f32 %v879_v46, %v839_v63 }
 0x1ab   :  { %v2594_v32 = vpop.permute.xlu0 %964  ;;  %v890_v36 = vadd.f32 %v882_v1, %v842_v41 }
 0x1ac   :  { %1637 = vset.pattern.permute.xlu1 %v1725_v21  ;;  %1652 = vset.pattern.permute.xlu0 %v1729_v7 }
 0x1ad   :  { %1184 = vperm.xlu1 %1637, %v2515_v31   ;;  %v865_v15 = vpop.permute.xlu1 %864  ;;  %1406 = vperm.xlu0 %1652, %v2549_v60  }
 0x1ae   :  { %v883_v21 = vmul.f32 %v865_v15, %v2220_v8  ;;  %v748_v15 = vrot.slane %v747_v53, 1 }
 0x1af   :  { %v973_v0 = vpop.permute.xlu0 %972 }
 0x1b0   :  { %v891_v4 = vadd.f32 %v883_v21, %v843_v61  ;;  %v749_v5 = vadd.f32 %v748_v15, %v747_v53 }
 0x1b1   :  { %1192 = vperm.xlu1 %1637, %v2463_v26   ;;  %v873_v17 = vpop.permute.xlu1 %872  ;;  %1418 = vperm.xlu0 %1652, %v2563_v30  }
 0x1b2   :  { %v885_v29 = vmul.f32 %v873_v17, %v2220_v8  ;;  %v2614_v56 = vadd.f32 %v931_v40, %v891_v4  ;;  %v978_v40 = vmul.f32 %v2584_v43, %v2232_v23  ;;  %v980_v4 = vmul.f32 %v2594_v32, %v2232_v23 }
 0x1b3   :  { %v1657_v12 = vpop.eup %1656 }
 0x1b4   :  { %v893_v24 = vadd.f32 %v885_v29, %v845_v51  ;;  %v997_v54 = vpop.permute.xlu0 %996  ;;  %v752_v51 = vadd.f32 %v751_v2, %v749_v5 }
 0x1b5   :  { %1196 = vperm.xlu1 %1637, %v2492_v57   ;;  %1430 = vperm.xlu0 %1652, %v2483_v37  }
 0x1b6   :  { %v897_v22 = vpop.permute.xlu1 %896  ;;  %v2621_v14 = vadd.f32 %v933_v44, %v893_v24  ;;  %v982_v44 = vmul.f32 %v973_v0, %v2232_v23  ;;  %v759_v32 = vsub.f32 0.0, %v752_v51 }
 0x1b7   :  { %v927_v18 = vmul.f32 %v897_v22, %v2222_v19 }
 0x1b8   :  { %v1009_v34 = vpop.permute.xlu0 %1008 }
 0x1b9   :  { %v935_v3 = vadd.f32 %v927_v18, %v887_v39  ;;  %1204 = vperm.xlu1 %1637, %v2455_v47   ;;  %1655 = vset.pattern.permute.xlu0 %v1730_v45  ;;  %v756_v39 = vadd.f32 1.0, %v1657_v12 }
 0x1ba   :  { %v2629_v58 = vpop.permute.xlu1 %904  ;;  %1516 = vperm.xlu0 %1655, %v2463_v26  }
 0x1bb   :  { %v2635_v59 = vadd.f32 %v975_v25, %v935_v3  ;;  %v760_v25 = vmul.f32 1.442695, %v759_v32  ;;  %1658 = vrcp.f32 %v756_v39 }
 0x1bc   :  { %v1017_v20 = vpop.permute.xlu0 %1016 }
 0x1bd   :  { %1212 = vperm.xlu1 %1637, %v2483_v37   ;;  %1660 = vpow2.f32 %v760_v25  ;;  %v1029_v15 = vmul.f32 %v1017_v20, %v2266_v28 }
 0x1be   :  { %v909_v61 = vpop.permute.xlu1 %908  ;;  %1528 = vperm.xlu0 %1655, %v2455_v47  }
 0x1bf   :  { %v930_v21 = vmul.f32 %v909_v61, %v2222_v19 }
 0x1c1   :  { %v938_v49 = vadd.f32 %v930_v21, %v890_v36  ;;  %1640 = vset.pattern.permute.xlu1 %v1726_v62  ;;  %v1041_v63 = vpop.permute.xlu0 %1040 }
 0x1c2   :  { %1236 = vperm.xlu1 %1640, %v2549_v60   ;;  %v917_v38 = vpop.permute.xlu1 %916  ;;  %1536 = vperm.xlu0 %1655, %v2483_v37  }
 0x1c3   :  { %v932_v10 = vmul.f32 %v917_v38, %v2222_v19  ;;  %v986_v17 = vadd.f32 %v978_v40, %v938_v49 }
 0x1c5   :  { %v940_v43 = vadd.f32 %v932_v10, %v2557_v13  ;;  %v1024_v13 = vmul.f32 %v997_v54, %v2266_v28  ;;  %v1053_v18 = vpop.permute.xlu0 %1052  ;;  %v1027_v54 = vmul.f32 %v1009_v34, %v2266_v28 }
 0x1c6   :  { %1240 = vperm.xlu1 %1640, %v2463_v26   ;;  %v925_v62 = vpop.permute.xlu1 %924 }
 0x1c7   :  { %v934_v29 = vmul.f32 %v925_v62, %v2222_v19  ;;  %v988_v46 = vadd.f32 %v980_v4, %v940_v43 }
 0x1c9   :  { %v942_v24 = vadd.f32 %v934_v29, %v2569_v48  ;;  %v1061_v1 = vpop.permute.xlu0 %1060 }
 0x1ca   :  { %1248 = vperm.xlu1 %1640, %v2563_v30  }
 0x1cb   :  { %v949_v11 = vpop.permute.xlu1 %948  ;;  %v2654_v22 = vadd.f32 %v982_v44, %v942_v24 }
 0x1cc   :  { %v976_v16 = vmul.f32 %v949_v11, %v2232_v23  ;;  %v801_v11 = vmul.f32 %v2415_v55, %v2213_v6 }
 0x1cd   :  { %v1069_v40 = vpop.permute.xlu0 %1068 }
 0x1ce   :  { %v984_v0 = vadd.f32 %v976_v16, %v2592_v52  ;;  %1256 = vperm.xlu1 %1640, %v2575_v35  }
 0x1cf   :  { %v953_v50 = vpop.permute.xlu1 %952 }
 0x1d0   :  { %v2660_v48 = vadd.f32 %v1024_v13, %v984_v0  ;;  %v881_v13 = vmul.f32 %v2588_v9, %v2220_v8  ;;  %v841_v0 = vadd.f32 %v2520_v42, %v801_v11  ;;  %v977_v8 = vmul.f32 %v953_v50, %v2232_v23 }
 0x1d2   :  { %1641 = vset.pattern.permute.xlu1 %v1728_v33  ;;  %v1093_v20 = vpop.permute.xlu0 %1092  ;;  %v889_v55 = vadd.f32 %v881_v13, %v841_v0 }
 0x1d3   :  { %1272 = vperm.xlu1 %1641, %v2515_v31   ;;  %v961_v3 = vpop.permute.xlu1 %960 }
 0x1d4   :  { %v979_v53 = vmul.f32 %v961_v3, %v2232_v23 }
 0x1d6   :  { %v987_v52 = vadd.f32 %v979_v53, %v2614_v56  ;;  %v2677_v56 = vpop.eup %1658  ;;  %v1105_v44 = vpop.permute.xlu0 %1104 }
 0x1d7   :  { %1280 = vperm.xlu1 %1641, %v2463_v26   ;;  %v969_v41 = vpop.permute.xlu1 %968  ;;  %v1661_v5 = vpop.eup %1660  ;;  %v1071_v38 = vmul.f32 %v2677_v56, %v1041_v63  ;;  %v1074_v62 = vmul.f32 %v2677_v56, %v1053_v18  ;;  %v1076_v12 = vmul.f32 %v2677_v56, %v1061_v1  ;;  %v929_v18 = vmul.f32 %v2629_v58, %v2222_v19 }
 0x1d8   :  { %v981_v61 = vmul.f32 %v969_v41, %v2232_v23  ;;  %v2670_v36 = vadd.f32 %v1027_v54, %v987_v52  ;;  %v762_v10 = vadd.f32 1.0, %v1661_v5 }
 0x1d9   :  { %v937_v54 = vadd.f32 %v929_v18, %v889_v55 }
 0x1da   :  { %v989_v33 = vadd.f32 %v981_v61, %v2621_v14  ;;  %1662 = vrcp.f32 %v762_v10 }
 0x1db   :  { %1284 = vperm.xlu1 %1641, %v2492_v57   ;;  %v985_v58 = vadd.f32 %v977_v8, %v937_v54 }
 0x1dc   :  { %v993_v34 = vpop.permute.xlu1 %992  ;;  %v2674_v21 = vadd.f32 %v1029_v15, %v989_v33 }
 0x1dd   :  { %v1023_v49 = vmul.f32 %v993_v34, %v2266_v28 }
 0x1df   :  { %v1031_v2 = vadd.f32 %v1023_v49, %v2635_v59  ;;  %1292 = vperm.xlu1 %1641, %v2455_v47  }
 0x1e0   :  { %v1001_v4 = vpop.permute.xlu1 %1000 }
 0x1e1   :  { %v2682_v14 = vadd.f32 %v1071_v38, %v1031_v2  ;;  %v1025_v53 = vmul.f32 %v1001_v4, %v2266_v28 }
 0x1e3   :  { %1643 = vset.pattern.permute.xlu1 %v1727_v27  ;;  %v1033_v52 = vadd.f32 %v1025_v53, %v985_v58 }
 0x1e4   :  { %1341 = vperm.xlu1 %1643, %v2549_v60   ;;  %v1005_v43 = vpop.permute.xlu1 %1004 }
 0x1e5   :  { %v1026_v51 = vmul.f32 %v1005_v43, %v2266_v28 }
 0x1e7   :  { %v1034_v29 = vadd.f32 %v1026_v51, %v986_v17  ;;  %v1113_v17 = vpop.permute.xlu0 %1112  ;;  %v2710_v42 = vpop.eup %1662 }
 0x1e8   :  { %1644 = vset.pattern.permute.xlu1 %v1729_v7  ;;  %v1013_v59 = vpop.permute.xlu1 %1012  ;;  %v1125_v2 = vmul.f32 %v2710_v42, %v1113_v17 }
 0x1e9   :  { %v1028_v63 = vmul.f32 %v1013_v59, %v2266_v28  ;;  %1402 = vperm.xlu1 %1644, %v2515_v31   ;;  %v2691_v24 = vadd.f32 %v1074_v62, %v1034_v29 }
 0x1eb   :  { %v1036_v32 = vadd.f32 %v1028_v63, %v988_v46  ;;  %v1078_v46 = vmul.f32 %v2677_v56, %v1069_v40  ;;  %v2712_v19 = vpop.permute.xlu0 %1136 }
 0x1ec   :  { %v1021_v16 = vpop.permute.xlu1 %1020 }
 0x1ed   :  { %v1030_v39 = vmul.f32 %v1021_v16, %v2266_v28  ;;  %1645 = vset.pattern.permute.xlu1 %v1727_v27  ;;  %v1084_v25 = vadd.f32 %v1076_v12, %v1036_v32 }
 0x1ee   :  { %1345 = vperm.xlu1 %1645, %v2463_v26  }
 0x1ef   :  { %v1038_v6 = vadd.f32 %v1030_v39, %v2654_v22  ;;  %v1120_v22 = vmul.f32 %v2710_v42, %v1093_v20  ;;  %v2719_v61 = vpop.permute.xlu0 %1148 }
 0x1f1   :  { %v1045_v9 = vpop.permute.xlu1 %1044  ;;  %v1086_v3 = vadd.f32 %v1078_v46, %v1038_v6 }
 0x1f2   :  { %v1072_v1 = vmul.f32 %v2677_v56, %v1045_v9  ;;  %1646 = vset.pattern.permute.xlu1 %v1729_v7 }
 0x1f3   :  { %1410 = vperm.xlu1 %1646, %v2463_v26   ;;  %v1123_v26 = vmul.f32 %v2710_v42, %v1105_v44  ;;  %v2727_v38 = vpop.permute.xlu0 %1156 }
 0x1f4   :  { %v1080_v23 = vadd.f32 %v1072_v1, %v2660_v48 }
 0x1f5   :  { %v1049_v50 = vpop.permute.xlu1 %1048 }
 0x1f6   :  { %v1073_v41 = vmul.f32 %v2677_v56, %v1049_v50  ;;  %v1128_v28 = vadd.f32 %v1120_v22, %v1080_v23 }
 0x1f7   :  { %1414 = vperm.xlu1 %1646, %v2492_v57  }
 0x1f8   :  { %v1081_v15 = vadd.f32 %v1073_v41, %v1033_v52 }
 0x1f9   :  { %v1057_v33 = vpop.permute.xlu1 %1056 }
 0x1fa   :  { %v1075_v40 = vmul.f32 %v2677_v56, %v1057_v33 }
 0x1fb   :  { %1648 = vset.pattern.permute.xlu1 %v1727_v27 }
 0x1fc   :  { %v1083_v34 = vadd.f32 %v1075_v40, %v2670_v36  ;;  %1353 = vperm.xlu1 %1648, %v2563_v30   ;;  %v2734_v36 = vpop.permute.xlu0 %1164 }
 0x1fd   :  { %v1065_v48 = vpop.permute.xlu1 %1064 }
 0x1fe   :  { %v1077_v49 = vmul.f32 %v2677_v56, %v1065_v48  ;;  %v1131_v5 = vadd.f32 %v1123_v26, %v1083_v34 }
 0x200   :  { %v1085_v4 = vadd.f32 %v1077_v49, %v2674_v21  ;;  %1357 = vperm.xlu1 %1648, %v2455_v47   ;;  %v2741_v59 = vpop.permute.xlu0 %1188 }
 0x202   :  { %v1089_v20 = vpop.permute.xlu1 %1088  ;;  %v1133_v10 = vadd.f32 %v1125_v2, %v1085_v4 }
 0x203   :  { %v1119_v43 = vmul.f32 %v2710_v42, %v1089_v20 }
 0x204   :  { %1649 = vset.pattern.permute.xlu1 %v1729_v7  ;;  %v2748_v32 = vpop.permute.xlu0 %1200 }
 0x205   :  { %v1127_v51 = vadd.f32 %v1119_v43, %v2682_v14  ;;  %1422 = vperm.xlu1 %1649, %v2455_v47  }
 0x206   :  { %v1097_v62 = vpop.permute.xlu1 %1096 }
 0x207   :  { %v1121_v44 = vmul.f32 %v2710_v42, %v1097_v62 }
 0x209   :  { %v1129_v29 = vadd.f32 %v1121_v44, %v1081_v15  ;;  %1650 = vset.pattern.permute.xlu1 %v1727_v27 }
 0x20a   :  { %1361 = vperm.xlu1 %1650, %v2575_v35   ;;  %v1101_v21 = vpop.permute.xlu1 %1100 }
 0x20b   :  { %v1122_v63 = vmul.f32 %v2710_v42, %v1101_v21 }
 0x20d   :  { %v1130_v12 = vadd.f32 %v1122_v63, %v2691_v24  ;;  %v2754_v24 = vsub.f32 1.0, %v2677_v56 }
 0x20e   :  { %1651 = vset.pattern.permute.xlu1 %v1729_v7  ;;  %v1109_v14 = vpop.permute.xlu1 %1108  ;;  %v1209_v7 = vpop.permute.xlu0 %1208 }
 0x20f   :  { %v1124_v47 = vmul.f32 %v2710_v42, %v1109_v14  ;;  %1426 = vperm.xlu1 %1651, %v2575_v35   ;;  %v1167_v54 = vmul.f32 %v2712_v19, %v2754_v24  ;;  %v1170_v19 = vmul.f32 %v2719_v61, %v2754_v24  ;;  %v1172_v33 = vmul.f32 %v2727_v38, %v2754_v24 }
 0x210   :  { %v1174_v61 = vmul.f32 %v2734_v36, %v2754_v24 }
 0x211   :  { %v1132_v11 = vadd.f32 %v1124_v47, %v1084_v25  ;;  %v1175_v58 = vadd.f32 %v1167_v54, %v1127_v51  ;;  %v2827_v54 = vmul.f32 %v2710_v42, %v2677_v56 }
 0x212   :  { %v1117_v13 = vpop.permute.xlu1 %1116  ;;  %v2759_v18 = vpop.permute.xlu0 %1232 }
 0x213   :  { %v1126_v16 = vmul.f32 %v2710_v42, %v1117_v13  ;;  %1653 = vset.pattern.permute.xlu1 %v1727_v27  ;;  %v1180_v34 = vadd.f32 %v1172_v33, %v1132_v11 }
 0x214   :  { %1365 = vperm.xlu1 %1653, %v2483_v37  }
 0x215   :  { %v1134_v17 = vadd.f32 %v1126_v16, %v1086_v3 }
 0x216   :  { %v2764_v8 = vpop.permute.xlu0 %1244 }
 0x217   :  { %v1141_v39 = vpop.permute.xlu1 %1140  ;;  %v1182_v20 = vadd.f32 %v1174_v61, %v1134_v17 }
 0x218   :  { %v1168_v0 = vmul.f32 %v1141_v39, %v2754_v24  ;;  %1654 = vset.pattern.permute.xlu1 %v1730_v45 }
 0x219   :  { %1508 = vperm.xlu1 %1654, %v2515_v31  }
 0x21a   :  { %v1176_v25 = vadd.f32 %v1168_v0, %v1128_v28  ;;  %v2774_v53 = vpop.permute.xlu0 %1252  ;;  %v1178_v28 = vadd.f32 %v1170_v19, %v1130_v12 }
 0x21b   :  { %v1145_v46 = vpop.permute.xlu1 %1144 }
 0x21c   :  { %v1169_v27 = vmul.f32 %v1145_v46, %v2754_v24 }
 0x21d   :  { %1512 = vperm.xlu1 %1654, %v2549_v60   ;;  %v2772_v60 = vsub.f32 1.0, %v2710_v42 }
 0x21e   :  { %v1177_v37 = vadd.f32 %v1169_v27, %v1129_v29  ;;  %v2780_v50 = vpop.permute.xlu0 %1260 }
 0x21f   :  { %v1153_v6 = vpop.permute.xlu1 %1152  ;;  %v1216_v38 = vmul.f32 %v2741_v59, %v2772_v60  ;;  %v1219_v36 = vmul.f32 %v2748_v32, %v2772_v60  ;;  %v1221_v47 = vmul.f32 %v1209_v7, %v2772_v60  ;;  %v2842_v33 = vmul.f32 %v2772_v60, %v2754_v24 }
 0x220   :  { %v1171_v55 = vmul.f32 %v1153_v6, %v2754_v24 }
 0x221   :  { %1520 = vperm.xlu1 %1654, %v2492_v57   ;;  %v1224_v43 = vadd.f32 %v1216_v38, %v1176_v25 }
 0x222   :  { %v1179_v9 = vadd.f32 %v1171_v55, %v1131_v5 }
 0x223   :  { %v1161_v45 = vpop.permute.xlu1 %1160 }
 0x224   :  { %v1173_v31 = vmul.f32 %v1161_v45, %v2754_v24  ;;  %v1227_v63 = vadd.f32 %v1219_v36, %v1179_v9 }
 0x225   :  { %1524 = vperm.xlu1 %1654, %v2563_v30  }
 0x226   :  { %v1181_v3 = vadd.f32 %v1173_v31, %v1133_v10 }
 0x228   :  { %v1185_v1 = vpop.permute.xlu1 %1184  ;;  %v2810_v13 = vadd.f32 %v1221_v47, %v1181_v3 }
 0x229   :  { %v1215_v22 = vmul.f32 %v1185_v1, %v2772_v60  ;;  %1532 = vperm.xlu1 %1654, %v2575_v35   ;;  %v2790_v35 = vpop.permute.xlu0 %1337  ;;  %v2831_v1 = vmul.f32 %v2677_v56, %v2772_v60 }
 0x22b   :  { %v2778_v57 = vadd.f32 %v1215_v22, %v1175_v58  ;;  %v2835_v22 = vmul.f32 %v2710_v42, %v2754_v24 }
 0x22c   :  { %v1193_v23 = vpop.permute.xlu1 %1192 }
 0x22d   :  { %v1217_v30 = vmul.f32 %v1193_v23, %v2772_v60  ;;  %v2799_v2 = vpop.permute.xlu0 %1349 }
 0x22f   :  { %v2785_v52 = vadd.f32 %v1217_v30, %v1177_v37 }
 0x230   :  { %v1197_v41 = vpop.permute.xlu1 %1196 }
 0x231   :  { %v1218_v15 = vmul.f32 %v1197_v41, %v2772_v60  ;;  %v1277_v44 = vpop.permute.xlu0 %1276 }
 0x233   :  { %v2792_v40 = vadd.f32 %v1218_v15, %v1178_v28 }
 0x234   :  { %v1205_v26 = vpop.permute.xlu1 %1204 }
 0x235   :  { %v1220_v48 = vmul.f32 %v1205_v26, %v2772_v60  ;;  %v1289_v12 = vpop.permute.xlu0 %1288 }
 0x237   :  { %v2797_v49 = vadd.f32 %v1220_v48, %v1180_v34 }
 0x238   :  { %v1213_v5 = vpop.permute.xlu1 %1212 }
 0x239   :  { %v1222_v4 = vmul.f32 %v1213_v5, %v2772_v60  ;;  %v2815_v17 = vpop.permute.xlu0 %1296 }
 0x23b   :  { %v2804_v10 = vadd.f32 %v1222_v4, %v1182_v20 }
 0x23d   :  { %v1237_v51 = vpop.permute.xlu1 %1236  ;;  %v2819_v0 = vpop.permute.xlu0 %1300 }
 0x23e   :  { %v1264_v62 = vadd.f32 %v1237_v51, %v1224_v43 }
 0x240   :  { %v1304_v7 = vadd.f32 %v1277_v44, %v1264_v62 }
 0x241   :  { %v1241_v29 = vpop.permute.xlu1 %1240  ;;  %v1407_v46 = vpop.permute.xlu0 %1406 }
 0x242   :  { %v1265_v21 = vadd.f32 %v1241_v29, %v2785_v52  ;;  %v1434_v27 = vadd.f32 %v1407_v46, %v1224_v43  ;;  %v1312_v9 = vmax.f32 %v1304_v7, 0.0 }
 0x244   :  { %v1442_v6 = vadd.f32 %v1434_v27, %v1277_v44  ;;  %v1321_v23 = vmul.f32 %v2827_v54, %v1312_v9 }
 0x245   :  { %v1249_v14 = vpop.permute.xlu1 %1248  ;;  %v1419_v20 = vpop.permute.xlu0 %1418 }
 0x246   :  { %v1267_v11 = vadd.f32 %v1249_v14, %v1227_v63  ;;  %v1450_v3 = vmax.f32 %v1442_v6, 0.0  ;;  %v1437_v24 = vadd.f32 %v1419_v20, %v1227_v63 }
 0x248   :  { %v1459_v28 = vmul.f32 %v2835_v22, %v1450_v3  ;;  %v1307_v47 = vadd.f32 %v1289_v12, %v1267_v11  ;;  %v1445_v46 = vadd.f32 %v1437_v24, %v1289_v12  ;;  %v1263_v12 = vadd.f32 %v2759_v18, %v2778_v57 }
 0x249   :  { %v1257_v59 = vpop.permute.xlu1 %1256 }
 0x24a   :  { %v2813_v16 = vadd.f32 %v1257_v59, %v2810_v13  ;;  %v1453_v63 = vmax.f32 %v1445_v46, 0.0 }
 0x24e   :  { %v2817_v39 = vpop.permute.xlu1 %1272 }
 0x252   :  { %v1281_v32 = vpop.permute.xlu1 %1280 }
 0x253   :  { %v1305_v61 = vadd.f32 %v1281_v32, %v1265_v21 }
 0x255   :  { %v1313_v38 = vmax.f32 %v1305_v61, 0.0  ;;  %v1303_v61 = vadd.f32 %v2817_v39, %v1263_v12 }
 0x256   :  { %v2821_v25 = vpop.permute.xlu1 %1284 }
 0x257   :  { %v1322_v29 = vmul.f32 %v2827_v54, %v1313_v38 }
 0x25a   :  { %v2823_v37 = vpop.permute.xlu1 %1292 }
 0x25f   :  { %v1342_v55 = vpop.permute.xlu1 %1341 }
 0x260   :  { %v1369_v45 = vadd.f32 %v1342_v55, %v1264_v62  ;;  %v1475_v31 = vadd.f32 %v1434_v27, %v1342_v55 }
 0x262   :  { %v1377_v58 = vmax.f32 %v1369_v45, 0.0  ;;  %v1483_v19 = vmax.f32 %v1475_v31, 0.0 }
 0x264   :  { %v1386_v30 = vmul.f32 %v2831_v1, %v1377_v58  ;;  %v1403_v41 = vpop.permute.xlu1 %1402  ;;  %v1492_v56 = vmul.f32 %v2842_v33, %v1483_v19 }
 0x266   :  { %v1394_v15 = vadd.f32 %v1386_v30, %v1321_v23  ;;  %v1462_v30 = vmul.f32 %v2835_v22, %v1453_v63 }
 0x268   :  { %v1467_v26 = vadd.f32 %v1459_v28, %v1394_v15 }
 0x269   :  { %v1346_v34 = vpop.permute.xlu1 %1345 }
 0x26a   :  { %v1370_v48 = vadd.f32 %v1346_v34, %v1265_v21  ;;  %v2845_v42 = vadd.f32 %v1492_v56, %v1467_v26  ;;  %v1368_v56 = vadd.f32 %v2790_v35, %v1263_v12  ;;  %v1433_v26 = vadd.f32 %v1403_v41, %v2778_v57 }
 0x26b   :  { %v1311_v41 = vmax.f32 %v1303_v61, 0.0 }
 0x26c   :  { %v1378_v5 = vmax.f32 %v1370_v48, 0.0  ;;  %v1266_v48 = vadd.f32 %v2764_v8, %v2792_v40 }
 0x26e   :  { %v1411_v4 = vpop.permute.xlu1 %1410  ;;  %v1387_v51 = vmul.f32 %v2831_v1, %v1378_v5  ;;  %v1376_v5 = vmax.f32 %v1368_v56, 0.0  ;;  %v1371_v57 = vadd.f32 %v2799_v2, %v1266_v48 }
 0x26f   :  { %v1435_v43 = vadd.f32 %v1411_v4, %v2785_v52  ;;  %v1315_v52 = vmax.f32 %v1307_v47, 0.0  ;;  %v1441_v4 = vadd.f32 %v1433_v26, %v2817_v39 }
 0x270   :  { %v1395_v59 = vadd.f32 %v1387_v51, %v1322_v29  ;;  %v1306_v51 = vadd.f32 %v2821_v25, %v1266_v48  ;;  %v1385_v8 = vmul.f32 %v2831_v1, %v1376_v5  ;;  %v1270_v29 = vadd.f32 %v2780_v50, %v2804_v10 }
 0x271   :  { %v1443_v62 = vadd.f32 %v1435_v43, %v1281_v32  ;;  %v1476_v44 = vadd.f32 %v1435_v43, %v1346_v34  ;;  %v1324_v3 = vmul.f32 %v2827_v54, %v1315_v52  ;;  %v1309_v43 = vadd.f32 %v2815_v17, %v2813_v16 }
 0x272   :  { %v1415_v60 = vpop.permute.xlu1 %1414  ;;  %v1449_v39 = vmax.f32 %v1441_v4, 0.0  ;;  %v1314_v46 = vmax.f32 %v1306_v51, 0.0 }
 0x273   :  { %v1451_v36 = vmax.f32 %v1443_v62, 0.0  ;;  %v1484_v14 = vmax.f32 %v1476_v44, 0.0  ;;  %v1436_v20 = vadd.f32 %v1415_v60, %v2792_v40  ;;  %v1431_v62 = vpop.permute.xlu0 %1430 }
 0x275   :  { %v1460_v21 = vmul.f32 %v2835_v22, %v1451_v36  ;;  %v1493_v6 = vmul.f32 %v2842_v33, %v1484_v14  ;;  %v1444_v40 = vadd.f32 %v1436_v20, %v2821_v25  ;;  %v1379_v36 = vmax.f32 %v1371_v57, 0.0 }
 0x277   :  { %v1354_v27 = vpop.permute.xlu1 %1353  ;;  %v1468_v7 = vadd.f32 %v1460_v21, %v1395_v59  ;;  %v1440_v59 = vadd.f32 %v1431_v62, %v2804_v10  ;;  %v1320_v21 = vmul.f32 %v2827_v54, %v1311_v41  ;;  %v1452_v52 = vmax.f32 %v1444_v40, 0.0  ;;  %v1517_v62 = vpop.permute.xlu0 %1516 }
 0x278   :  { %v1372_v55 = vadd.f32 %v1354_v27, %v1267_v11  ;;  %v1478_v9 = vadd.f32 %v1437_v24, %v1354_v27  ;;  %v1268_v24 = vadd.f32 %v2774_v53, %v2797_v49  ;;  %v1474_v27 = vadd.f32 %v1433_v26, %v2790_v35 }
 0x279   :  { %v2852_v32 = vadd.f32 %v1493_v6, %v1468_v7  ;;  %v1393_v35 = vadd.f32 %v1385_v8, %v1320_v21 }
 0x27a   :  { %v1380_v45 = vmax.f32 %v1372_v55, 0.0  ;;  %v1486_v23 = vmax.f32 %v1478_v9, 0.0  ;;  %v1308_v6 = vadd.f32 %v2823_v37, %v1268_v24  ;;  %v1482_v12 = vmax.f32 %v1474_v27, 0.0 }
 0x27b   :  { %v2854_v31 = vpop.permute.xlu1 %1357  ;;  %v1541_v21 = vmul.f32 %v1517_v62, %v2852_v32 }
 0x27c   :  { %v1389_v58 = vmul.f32 %v2831_v1, %v1380_v45  ;;  %v1495_v11 = vmul.f32 %v2842_v33, %v1486_v23  ;;  %v1373_v53 = vadd.f32 %v2854_v31, %v1268_v24  ;;  %v1323_v23 = vmul.f32 %v2827_v54, %v1314_v46 }
 0x27d   :  { %v1491_v57 = vmul.f32 %v2842_v33, %v1482_v12 }
 0x27e   :  { %v1397_v19 = vadd.f32 %v1389_v58, %v1324_v3  ;;  %v1477_v3 = vadd.f32 %v1436_v20, %v2799_v2  ;;  %v1381_v58 = vmax.f32 %v1373_v53, 0.0  ;;  %v1448_v2 = vadd.f32 %v1440_v59, %v2819_v0 }
 0x280   :  { %v1423_v28 = vpop.permute.xlu1 %1422  ;;  %v1470_v15 = vadd.f32 %v1462_v30, %v1397_v19  ;;  %v1485_v5 = vmax.f32 %v1477_v3, 0.0 }
 0x281   :  { %v1438_v14 = vadd.f32 %v1423_v28, %v2797_v49  ;;  %v1458_v49 = vmul.f32 %v2835_v22, %v1449_v39  ;;  %v1316_v28 = vmax.f32 %v1308_v6, 0.0  ;;  %v1456_v39 = vmax.f32 %v1448_v2, 0.0 }
 0x282   :  { %v2864_v34 = vadd.f32 %v1495_v11, %v1470_v15  ;;  %v1388_v11 = vmul.f32 %v2831_v1, %v1379_v36  ;;  %v1461_v15 = vmul.f32 %v2835_v22, %v1452_v52 }
 0x283   :  { %v1446_v55 = vadd.f32 %v1438_v14, %v2823_v37  ;;  %v1466_v37 = vadd.f32 %v1458_v49, %v1393_v35  ;;  %v1325_v51 = vmul.f32 %v2827_v54, %v1316_v28 }
 0x285   :  { %v1362_v18 = vpop.permute.xlu1 %1361  ;;  %v1454_v56 = vmax.f32 %v1446_v55, 0.0  ;;  %v1499_v24 = vadd.f32 %v1491_v57, %v1466_v37  ;;  %v1561_v37 = vstv %s1580_s11 }
 0x286   :  { %v1374_v38 = vadd.f32 %v1362_v18, %v2813_v16  ;;  %v1317_v16 = vmax.f32 %v1309_v43, 0.0  ;;  %v1479_v43 = vadd.f32 %v1438_v14, %v2854_v31 }
 0x287   :  { %v1463_v8 = vmul.f32 %v2835_v22, %v1454_v56 }
 0x288   :  { %v1382_v44 = vmax.f32 %v1374_v38, 0.0  ;;  %v1326_v10 = vmul.f32 %v2827_v54, %v1317_v16  ;;  %v1396_v38 = vadd.f32 %v1388_v11, %v1323_v23  ;;  %v1494_v16 = vmul.f32 %v2842_v33, %v1485_v5 }
 0x289   :  { %v1487_v31 = vmax.f32 %v1479_v43, 0.0 }
 0x28a   :  { %v1427_v60 = vpop.permute.xlu1 %1426  ;;  %v1391_v25 = vmul.f32 %v2831_v1, %v1382_v44 }
 0x28b   :  { %v1439_v47 = vadd.f32 %v1427_v60, %v2810_v13  ;;  %v1310_v13 = vadd.f32 %v2819_v0, %v1270_v29  ;;  %v1469_v0 = vadd.f32 %v1461_v15, %v1396_v38 }
 0x28c   :  { %v1399_v30 = vadd.f32 %v1391_v25, %v1326_v10  ;;  %v1465_v25 = vmul.f32 %v2835_v22, %v1456_v39  ;;  %v1529_v10 = vpop.permute.xlu0 %1528 }
 0x28d   :  { %v1447_v7 = vadd.f32 %v1439_v47, %v2815_v17  ;;  %v1480_v50 = vadd.f32 %v1439_v47, %v1362_v18  ;;  %v1390_v18 = vmul.f32 %v2831_v1, %v1381_v58  ;;  %v1318_v4 = vmax.f32 %v1310_v13, 0.0 }
 0x28f   :  { %v1455_v9 = vmax.f32 %v1447_v7, 0.0  ;;  %v1488_v63 = vmax.f32 %v1480_v50, 0.0  ;;  %v1366_v45 = vpop.permute.xlu1 %1365  ;;  %v1398_v40 = vadd.f32 %v1390_v18, %v1325_v51  ;;  %v1327_v60 = vmul.f32 %v2827_v54, %v1318_v4 }
 0x290   :  { %v1375_v17 = vadd.f32 %v1366_v45, %v1270_v29  ;;  %v1481_v36 = vadd.f32 %v1440_v59, %v1366_v45  ;;  %v1496_v50 = vmul.f32 %v2842_v33, %v1487_v31  ;;  %v1537_v35 = vpop.permute.xlu0 %1536 }
 0x291   :  { %v1464_v19 = vmul.f32 %v2835_v22, %v1455_v9  ;;  %v1497_v61 = vmul.f32 %v2842_v33, %v1488_v63  ;;  %v1471_v46 = vadd.f32 %v1463_v8, %v1398_v40 }
 0x292   :  { %v1383_v26 = vmax.f32 %v1375_v17, 0.0  ;;  %v1489_v54 = vmax.f32 %v1481_v36, 0.0 }
 0x293   :  { %v1472_v48 = vadd.f32 %v1464_v19, %v1399_v30  ;;  %v1504_v52 = vadd.f32 %v1496_v50, %v1471_v46 }
 0x294   :  { %v1509_v20 = vpop.permute.xlu1 %1508  ;;  %v1392_v44 = vmul.f32 %v2831_v1, %v1383_v26  ;;  %v1502_v1 = vadd.f32 %v1494_v16, %v1469_v0 }
 0x295   :  { %v1505_v41 = vadd.f32 %v1497_v61, %v1472_v48  ;;  %v1539_v14 = vmul.f32 %v1509_v20, %v1499_v24  ;;  %v1544_v9 = vmul.f32 %v1529_v10, %v1504_v52 }
 0x296   :  { %v1400_v53 = vadd.f32 %v1392_v44, %v1327_v60 }
 0x298   :  { %v1513_v29 = vpop.permute.xlu1 %1512  ;;  %v1473_v13 = vadd.f32 %v1465_v25, %v1400_v53 }
 0x299   :  { %v1540_v47 = vmul.f32 %v1513_v29, %v2845_v42  ;;  %v1498_v42 = vmul.f32 %v2842_v33, %v1489_v54 }
 0x29b   :  { %v1547_v27 = vadd.f32 %v1540_v47, %v1539_v14  ;;  %v1506_v63 = vadd.f32 %v1498_v42, %v1473_v13 }
 0x29c   :  { %v1521_v7 = vpop.permute.xlu1 %1520 }
 0x29d   :  { %v1542_v6 = vmul.f32 %v1521_v7, %v1502_v1  ;;  %v1548_v49 = vadd.f32 %v1547_v27, %v1541_v21  ;;  %v1546_v17 = vmul.f32 %v1537_v35, %v1506_v63 }
 0x29f   :  { %v1549_v59 = vadd.f32 %v1548_v49, %v1542_v6 }
 0x2a0   :  { %v1525_v55 = vpop.permute.xlu1 %1524 }
 0x2a1   :  { %v1543_v32 = vmul.f32 %v1525_v55, %v2864_v34 }
 0x2a3   :  { %v1550_v45 = vadd.f32 %v1549_v59, %v1543_v32 }
 0x2a4   :  { %v1533_v22 = vpop.permute.xlu1 %1532 }
 0x2a5   :  { %v1545_v3 = vmul.f32 %v1533_v22, %v1505_v41  ;;  %v1551_v58 = vadd.f32 %v1550_v45, %v1544_v9 }
 0x2a7   :  { %v1552_v23 = vadd.f32 %v1551_v58, %v1545_v3 }
 0x2a9   :  { %v1553_v12 = vadd.f32 %v1552_v23, %v1546_v17 }
 0x2ab   :  { %v1554_v30 = vrot.slane %v1553_v12, 4 }
 0x2ad   :  { %v1555_v19 = vadd.f32 %v1554_v30, %v1553_v12 }
 0x2af   :  { %v1556_v11 = vrot.slane %v1555_v19, 2 }
 0x2b1   :  { %v1557_v28 = vadd.f32 %v1556_v11, %v1555_v19 }
 0x2b3   :  { %v1558_v15 = vrot.slane %v1557_v28, 1 }
 0x2b5   :  { %v1559_v33 = vadd.f32 %v1558_v15, %v1557_v28 }
 0x2b7   :  { %v1562_v34 = vadd.f32 %v1561_v37, %v1559_v33 }
 0x2b9   :  { %1563 = vst [vmem:[#allocation5] sm:$0x1] %v1562_v34 }
 0x2ba   :  { %1695 = shalt.err (!%p1692_p9)
}
 0x2bb   :  { %1573 = dma.vmem_to_hbm [thread:$0]  %s1571_s13, 16, %s2922_s3, [#allocation3]  }
 0x2bc   :  { %1706 = dma.done.wait [#allocation3], 16  }
 0x2bd   :  { %1707 = vsyncadd [#allocation3], 4294967280 }
 0x2be   :  { %1577 = vsyncpa [#allocation3], 1 }
 0x2bf   :  { %1578 = vsyncpa [#allocation4], 1 }

</bundles_post_ra>
